<compile_context>
chip_gen: v7x
topology: tpu7x:2x2x1
jax: 0.10.0
libtpu: 0.0.40
codegen_flags: <defaults>
</compile_context>

<pallas_src>
import functools

import jax
import jax.numpy as jnp
from jax.experimental import pallas as pl
from jax.experimental.pallas import tpu as pltpu


def _round_up(n: int, m: int) -> int:
    return ((n + m - 1) // m) * m


def _head_out_width(num_actions: int) -> int:
    # Q lanes [0, A) padded up to a lane-dense multiple of 128.
    return _round_up(max(num_actions, 1), 128)


# -----------------------------------------------------------------------------
# Pallas kernel: full forward pass of BestPokerModel on one batch tile.
# -----------------------------------------------------------------------------
def best_poker_kernel(
    x_ref,
    # fc1 / fc2 (NoisyLinear, effective weights)
    w1_ref, b1_ref,
    w2_ref, b2_ref,
    # residual block 1
    r1w1_ref, r1b1_ref, r1w2_ref, r1b2_ref, r1g_ref, r1beta_ref,
    # residual block 2
    r2w1_ref, r2b1_ref, r2w2_ref, r2b2_ref, r2g_ref, r2beta_ref,
    # fused dueling heads
    hfw_ref, hfb_ref,   # (256, 256) = [value_fc | advantage_fc], (1, 256)
    hqw_ref, hqb_ref,   # (256, OUT) pre-combined dueling matrix, (1, OUT)
    # output
    q_ref,              # (TB, OUT) lane-dense; wrapper slices [:, :num_actions]
):
    f32 = jnp.float32

    def linear(h, w_ref, b_ref):
        # bf16 MXU operands, f32 accumulation; bias/activations stay f32.
        return jnp.dot(h.astype(w_ref.dtype), w_ref[...],
                       preferred_element_type=f32) + b_ref[...].astype(f32)

    def relu(h):
        return jnp.maximum(h, 0.0)

    def res_block(h, w1_ref, b1_ref, w2_ref, b2_ref, g_ref, beta_ref):
        out = relu(linear(h, w1_ref, b1_ref))
        out = linear(out, w2_ref, b2_ref) + h          # residual add
        # LayerNorm over feature axis, biased variance, eps=1e-5 (PyTorch default)
        mean = jnp.mean(out, axis=-1, keepdims=True)
        centered = out - mean
        var = jnp.mean(centered * centered, axis=-1, keepdims=True)
        out = centered * jax.lax.rsqrt(var + 1e-5)
        out = out * g_ref[...] + beta_ref[...]
        return relu(out)

    x = x_ref[...].astype(f32)

    # fc1 -> relu -> fc2 -> relu
    h = relu(linear(x, w1_ref, b1_ref))
    h = relu(linear(h, w2_ref, b2_ref))

    # two residual blocks
    h = res_block(h, r1w1_ref, r1b1_ref, r1w2_ref, r1b2_ref, r1g_ref, r1beta_ref)
    h = res_block(h, r2w1_ref, r2b1_ref, r2w2_ref, r2b2_ref, r2g_ref, r2beta_ref)

    # Fused dueling heads: one (TB,256)x(256,256) matmul produces both hidden
    # streams; one (TB,256)x(256,OUT) matmul produces q = value + adv - mean(adv)
    # directly (combine folded into the weights at prepare time).
    head = relu(linear(h, hfw_ref, hfb_ref))           # [value_hid | adv_hid]
    q_ref[...] = linear(head, hqw_ref, hqb_ref).astype(q_ref.dtype)


# -----------------------------------------------------------------------------
# Parameter construction (deterministic, mirrors shapes in __init__).
# NoisyLinear "training mode" effective weights: mu + sigma * epsilon.
# -----------------------------------------------------------------------------
def _noisy_linear_params(key, in_features, out_features, sigma_init=0.017):
    k_mu_w, k_mu_b, k_eps_w, k_eps_b = jax.random.split(key, 4)
    mu_range = 1.0 / (in_features ** 0.5)
    weight_mu = jax.random.uniform(
        k_mu_w, (out_features, in_features), jnp.float32, -mu_range, mu_range)
    weight_sigma = jnp.full((out_features, in_features),
                            sigma_init / (in_features ** 0.5), jnp.float32)
    weight_epsilon = jax.random.normal(k_eps_w, (out_features, in_features), jnp.float32)
    bias_mu = jax.random.uniform(k_mu_b, (out_features,), jnp.float32, -mu_range, mu_range)
    bias_sigma = jnp.full((out_features,), sigma_init / (out_features ** 0.5), jnp.float32)
    bias_epsilon = jax.random.normal(k_eps_b, (out_features,), jnp.float32)
    w_eff = weight_mu + weight_sigma * weight_epsilon
    b_eff = bias_mu + bias_sigma * bias_epsilon
    return w_eff, b_eff


def _linear_params(key, in_features, out_features):
    k_w, k_b = jax.random.split(key, 2)
    bound = 1.0 / (in_features ** 0.5)
    w = jax.random.uniform(k_w, (out_features, in_features), jnp.float32, -bound, bound)
    b = jax.random.uniform(k_b, (out_features,), jnp.float32, -bound, bound)
    return w, b


def make_params(key, input_dim, num_actions):
    keys = jax.random.split(key, 12)
    params = {}
    params["fc1"] = _noisy_linear_params(keys[0], input_dim, 256)
    params["fc2"] = _noisy_linear_params(keys[1], 256, 256)
    params["r1_fc1"] = _linear_params(keys[2], 256, 256)
    params["r1_fc2"] = _linear_params(keys[3], 256, 256)
    params["r1_ln"] = (jnp.ones((256,), jnp.float32), jnp.zeros((256,), jnp.float32))
    params["r2_fc1"] = _linear_params(keys[4], 256, 256)
    params["r2_fc2"] = _linear_params(keys[5], 256, 256)
    params["r2_ln"] = (jnp.ones((256,), jnp.float32), jnp.zeros((256,), jnp.float32))
    params["value_fc"] = _noisy_linear_params(keys[6], 256, 128)
    params["value_out"] = _noisy_linear_params(keys[7], 128, 1)
    params["advantage_fc"] = _noisy_linear_params(keys[8], 256, 128)
    params["advantage_out"] = _noisy_linear_params(keys[9], 128, num_actions)
    return params


# -----------------------------------------------------------------------------
# One-time parameter preparation: transpose, bias rows, head fusion, dueling
# combine folded into the output matmul, bf16 cast.  Done once at init so the
# per-step forward has zero transposes / reshapes / cross-lane mask reductions.
# -----------------------------------------------------------------------------
def prepare_params(params, num_actions, weight_dtype=jnp.bfloat16):
    def wt(w):   # PyTorch (out, in) -> kernel (in, out), cast to streaming dtype
        return jnp.transpose(w).astype(weight_dtype)

    def row(b):  # 1-D vector -> (1, out) f32 row for broadcast
        return b.reshape(1, -1).astype(jnp.float32)

    prep = {}
    prep["w1"], prep["b1"] = wt(params["fc1"][0]), row(params["fc1"][1])
    prep["w2"], prep["b2"] = wt(params["fc2"][0]), row(params["fc2"][1])
    for blk in ("r1", "r2"):
        w1, b1 = params[f"{blk}_fc1"]
        w2, b2 = params[f"{blk}_fc2"]
        g, beta = params[f"{blk}_ln"]
        prep[f"{blk}w1"], prep[f"{blk}b1"] = wt(w1), row(b1)
        prep[f"{blk}w2"], prep[f"{blk}b2"] = wt(w2), row(b2)
        prep[f"{blk}g"], prep[f"{blk}beta"] = row(g), row(beta)

    # Fused head-fc: columns [0:128) = value_fc, [128:256) = advantage_fc.
    vfw, vfb = params["value_fc"]          # (128, 256), (128,)
    afw, afb = params["advantage_fc"]      # (128, 256), (128,)
    hfw = jnp.concatenate([vfw.T, afw.T], axis=1)                 # (256, 256)
    hfb = jnp.concatenate([vfb, afb], axis=0)                     # (256,)
    prep["hfw"], prep["hfb"] = hfw.astype(weight_dtype), row(hfb)

    # Fused output matmul with the dueling combine folded in:
    #   q_j = value + adv_j - mean_k(adv_k)
    # value hidden rows get value_out weights broadcast to every action lane;
    # advantage hidden rows get (adv_out[:, j] - mean_k adv_out[:, k]).
    A = num_actions
    OUT = _head_out_width(A)
    vow, vob = params["value_out"]         # (1, 128), (1,)
    aow, aob = params["advantage_out"]     # (A, 128), (A,)
    adv_w = aow.T                                              # (128, A)
    adv_w_centered = adv_w - jnp.mean(adv_w, axis=1, keepdims=True)
    hqw = jnp.zeros((256, OUT), jnp.float32)
    hqw = hqw.at[:128, :A].set(jnp.broadcast_to(vow.T, (128, A)))   # value stream
    hqw = hqw.at[128:, :A].set(adv_w_centered)                      # advantage stream
    hqb = jnp.zeros((1, OUT), jnp.float32)
    hqb = hqb.at[0, :A].set(vob[0] + aob - jnp.mean(aob))
    prep["hqw"], prep["hqb"] = hqw.astype(weight_dtype), hqb.astype(jnp.float32)
    return prep


_ARG_ORDER = (
    "w1", "b1", "w2", "b2",
    "r1w1", "r1b1", "r1w2", "r1b2", "r1g", "r1beta",
    "r2w1", "r2b1", "r2w2", "r2b2", "r2g", "r2beta",
    "hfw", "hfb", "hqw", "hqb",
)


# -----------------------------------------------------------------------------
# Forward: batch grid, weights resident in VMEM, batch tiles pipelined.
# -----------------------------------------------------------------------------
@functools.partial(jax.jit, static_argnames=("tile_b",))
def _forward_padded(x_padded, prep, tile_b):
    B, D = x_padded.shape
    weights = [prep[n] for n in _ARG_ORDER]
    out_pad = prep["hqw"].shape[1]

    grid = (B // tile_b,)
    x_spec = pl.BlockSpec((tile_b, D), lambda i: (i, 0))
    w_specs = [pl.BlockSpec(w.shape, lambda i: (0, 0)) for w in weights]
    out_spec = pl.BlockSpec((tile_b, out_pad), lambda i: (i, 0))

    return pl.pallas_call(
        best_poker_kernel,
        out_shape=jax.ShapeDtypeStruct((B, out_pad), jnp.float32),
        grid=grid,
        in_specs=[x_spec] + w_specs,
        out_specs=out_spec,
        compiler_params=pltpu.CompilerParams(
            dimension_semantics=("parallel",)),
    )(x_padded, *weights)


def best_poker_forward(x, prep, num_actions, tile_b=256):
    """Q-values (B, num_actions). Pads batch to a tile multiple internally."""
    B = x.shape[0]
    tb = min(tile_b, _round_up(max(B, 1), 8))   # tiny RL-acting batches: one tile
    tb = _round_up(tb, 8)
    B_pad = _round_up(B, tb)
    if B_pad != B:
        x = jnp.pad(x, ((0, B_pad - B), (0, 0)))
    q_padded = _forward_padded(x, prep, tb)
    return q_padded[:B, :num_actions]


# -----------------------------------------------------------------------------
# References.
# -----------------------------------------------------------------------------
def reference_forward_prepared(x, prep, num_actions):
    """Mirrors the kernel math exactly (bf16 dot operands, f32 accumulate)."""
    f32 = jnp.float32

    def lin(h, w, b):
        return jnp.dot(h.astype(w.dtype), w, preferred_element_type=f32) + b

    def relu(h):
        return jnp.maximum(h, 0.0)

    def resblk(h, w1, b1, w2, b2, g, beta):
        out = relu(lin(h, w1, b1))
        out = lin(out, w2, b2) + h
        mean = jnp.mean(out, -1, keepdims=True)
        c = out - mean
        var = jnp.mean(c * c, -1, keepdims=True)
        out = c * jax.lax.rsqrt(var + 1e-5) * g + beta
        return relu(out)

    h = relu(lin(x.astype(f32), prep["w1"], prep["b1"]))
    h = relu(lin(h, prep["w2"], prep["b2"]))
    h = resblk(h, prep["r1w1"], prep["r1b1"], prep["r1w2"], prep["r1b2"],
               prep["r1g"], prep["r1beta"])
    h = resblk(h, prep["r2w1"], prep["r2b1"], prep["r2w2"], prep["r2b2"],
               prep["r2g"], prep["r2beta"])
    head = relu(lin(h, prep["hfw"], prep["hfb"]))
    q = lin(head, prep["hqw"], prep["hqb"])
    return q[:, :num_actions]


def reference_forward_f32(x, params):
    """Pure-f32 reference matching the PyTorch module semantics exactly."""
    def lin(h, wb):
        w, b = wb
        return h @ w.T + b

    def relu(h):
        return jnp.maximum(h, 0.0)

    def resblk(h, w1b1, w2b2, ln):
        out = relu(lin(h, w1b1))
        out = lin(out, w2b2) + h
        mean = jnp.mean(out, axis=-1, keepdims=True)
        var = jnp.mean((out - mean) ** 2, axis=-1, keepdims=True)
        out = (out - mean) / jnp.sqrt(var + 1e-5) * ln[0] + ln[1]
        return relu(out)

    h = relu(lin(x, params["fc1"]))
    h = relu(lin(h, params["fc2"]))
    h = resblk(h, params["r1_fc1"], params["r1_fc2"], params["r1_ln"])
    h = resblk(h, params["r2_fc1"], params["r2_fc2"], params["r2_ln"])
    v = lin(relu(lin(h, params["value_fc"])), params["value_out"])
    a = lin(relu(lin(h, params["advantage_fc"])), params["advantage_out"])
    return v + a - jnp.mean(a, axis=1, keepdims=True)


if __name__ == "__main__":
    INPUT_DIM = 64
    NUM_ACTIONS = 6
    BATCH = 4

    key = jax.random.PRNGKey(0)
    k_x, k_p, k_x2 = jax.random.split(key, 3)
    x = jax.random.normal(k_x, (BATCH, INPUT_DIM), jnp.float32)
    params = make_params(k_p, INPUT_DIM, NUM_ACTIONS)
    prep = prepare_params(params, NUM_ACTIONS)

    # Small (RL acting) batch.
    q = jax.block_until_ready(best_poker_forward(x, prep, NUM_ACTIONS))
    assert q.shape == (BATCH, NUM_ACTIONS)

    q_ref = reference_forward_prepared(x, prep, NUM_ACTIONS)
    assert jnp.allclose(q, q_ref, atol=5e-3, rtol=5e-3), (
        f"quantized-ref mismatch: max abs err {jnp.max(jnp.abs(q - q_ref))}")

    q_f32 = reference_forward_f32(x, params)
    assert jnp.allclose(q, q_f32, atol=1.5e-1, rtol=1.5e-1), (
        f"f32-ref mismatch: max abs err {jnp.max(jnp.abs(q - q_f32))}")

    # Larger batch: exercises grid pipelining + batch padding (grid=(3,)).
    x2 = jax.random.normal(k_x2, (40, INPUT_DIM), jnp.float32)
    q2 = jax.block_until_ready(best_poker_forward(x2, prep, NUM_ACTIONS, tile_b=16))
    q2_ref = reference_forward_prepared(x2, prep, NUM_ACTIONS)
    assert q2.shape == (40, NUM_ACTIONS)
    assert jnp.allclose(q2, q2_ref, atol=5e-3, rtol=5e-3), (
        f"batched mismatch: max abs err {jnp.max(jnp.abs(q2 - q2_ref))}")

    print("KERNEL_OK")
</pallas_src>

<mosaic_0001>
module attributes {stable_mosaic.version = 11 : i64} {
  func.func @best_poker_kernel(%arg0: i32, %arg1: memref<8x64xf32, #tpu.memory_space<vmem>>, %arg2: memref<64x256xbf16, #tpu.memory_space<vmem>>, %arg3: memref<1x256xf32, #tpu.memory_space<vmem>>, %arg4: memref<256x256xbf16, #tpu.memory_space<vmem>>, %arg5: memref<1x256xf32, #tpu.memory_space<vmem>>, %arg6: memref<256x256xbf16, #tpu.memory_space<vmem>>, %arg7: memref<1x256xf32, #tpu.memory_space<vmem>>, %arg8: memref<256x256xbf16, #tpu.memory_space<vmem>>, %arg9: memref<1x256xf32, #tpu.memory_space<vmem>>, %arg10: memref<1x256xf32, #tpu.memory_space<vmem>>, %arg11: memref<1x256xf32, #tpu.memory_space<vmem>>, %arg12: memref<256x256xbf16, #tpu.memory_space<vmem>>, %arg13: memref<1x256xf32, #tpu.memory_space<vmem>>, %arg14: memref<256x256xbf16, #tpu.memory_space<vmem>>, %arg15: memref<1x256xf32, #tpu.memory_space<vmem>>, %arg16: memref<1x256xf32, #tpu.memory_space<vmem>>, %arg17: memref<1x256xf32, #tpu.memory_space<vmem>>, %arg18: memref<256x256xbf16, #tpu.memory_space<vmem>>, %arg19: memref<1x256xf32, #tpu.memory_space<vmem>>, %arg20: memref<256x128xbf16, #tpu.memory_space<vmem>>, %arg21: memref<1x128xf32, #tpu.memory_space<vmem>>, %arg22: memref<8x128xf32, #tpu.memory_space<vmem>>) attributes {dimension_semantics = [#tpu.dimension_semantics<parallel>], iteration_bounds = array<i64: 1>, scalar_prefetch = 0 : i64, scratch_operands = 0 : i64, tpu.core_type = #tpu.core_type<tc>, window_params = [{transform_indices = @transform_0, window_bounds = array<i64: 8, 64>}, {pipeline_mode = #tpu.pipeline_mode<synchronous>, transform_indices = @transform_1, window_bounds = array<i64: 64, 256>}, {pipeline_mode = #tpu.pipeline_mode<synchronous>, transform_indices = @transform_2, window_bounds = array<i64: 1, 256>}, {pipeline_mode = #tpu.pipeline_mode<synchronous>, transform_indices = @transform_3, window_bounds = array<i64: 256, 256>}, {pipeline_mode = #tpu.pipeline_mode<synchronous>, transform_indices = @transform_4, window_bounds = array<i64: 1, 256>}, {pipeline_mode = #tpu.pipeline_mode<synchronous>, transform_indices = @transform_5, window_bounds = array<i64: 256, 256>}, {pipeline_mode = #tpu.pipeline_mode<synchronous>, transform_indices = @transform_6, window_bounds = array<i64: 1, 256>}, {pipeline_mode = #tpu.pipeline_mode<synchronous>, transform_indices = @transform_7, window_bounds = array<i64: 256, 256>}, {pipeline_mode = #tpu.pipeline_mode<synchronous>, transform_indices = @transform_8, window_bounds = array<i64: 1, 256>}, {pipeline_mode = #tpu.pipeline_mode<synchronous>, transform_indices = @transform_9, window_bounds = array<i64: 1, 256>}, {pipeline_mode = #tpu.pipeline_mode<synchronous>, transform_indices = @transform_10, window_bounds = array<i64: 1, 256>}, {pipeline_mode = #tpu.pipeline_mode<synchronous>, transform_indices = @transform_11, window_bounds = array<i64: 256, 256>}, {pipeline_mode = #tpu.pipeline_mode<synchronous>, transform_indices = @transform_12, window_bounds = array<i64: 1, 256>}, {pipeline_mode = #tpu.pipeline_mode<synchronous>, transform_indices = @transform_13, window_bounds = array<i64: 256, 256>}, {pipeline_mode = #tpu.pipeline_mode<synchronous>, transform_indices = @transform_14, window_bounds = array<i64: 1, 256>}, {pipeline_mode = #tpu.pipeline_mode<synchronous>, transform_indices = @transform_15, window_bounds = array<i64: 1, 256>}, {pipeline_mode = #tpu.pipeline_mode<synchronous>, transform_indices = @transform_16, window_bounds = array<i64: 1, 256>}, {pipeline_mode = #tpu.pipeline_mode<synchronous>, transform_indices = @transform_17, window_bounds = array<i64: 256, 256>}, {pipeline_mode = #tpu.pipeline_mode<synchronous>, transform_indices = @transform_18, window_bounds = array<i64: 1, 256>}, {pipeline_mode = #tpu.pipeline_mode<synchronous>, transform_indices = @transform_19, window_bounds = array<i64: 256, 128>}, {pipeline_mode = #tpu.pipeline_mode<synchronous>, transform_indices = @transform_20, window_bounds = array<i64: 1, 128>}, {transform_indices = @transform_21, window_bounds = array<i64: 8, 128>}]} {
    %c0 = arith.constant 0 : index
    %c0_0 = arith.constant 0 : index
    %0 = vector.load %arg1[%c0, %c0_0] : memref<8x64xf32, #tpu.memory_space<vmem>>, vector<8x64xf32>
    %1 = arith.truncf %0 : vector<8x64xf32> to vector<8x64xbf16>
    %c0_1 = arith.constant 0 : index
    %c0_2 = arith.constant 0 : index
    %2 = vector.load %arg2[%c0_1, %c0_2] : memref<64x256xbf16, #tpu.memory_space<vmem>>, vector<64x256xbf16>
    %cst = arith.constant dense<0.000000e+00> : vector<8x256xf32>
    %3 = tpu.matmul %1, %2, %cst {dimension_numbers = #tpu.dot_dimension_numbers<[1], [0], [0], [1], [0, 0, 1, 1], [], []>} : vector<8x64xbf16>, vector<64x256xbf16>, vector<8x256xf32> -> vector<8x256xf32>
    %c0_3 = arith.constant 0 : index
    %c0_4 = arith.constant 0 : index
    %4 = vector.load %arg3[%c0_3, %c0_4] : memref<1x256xf32, #tpu.memory_space<vmem>>, vector<1x256xf32>
    %5 = vector.broadcast %4 : vector<1x256xf32> to vector<8x256xf32>
    %6 = arith.addf %3, %5 : vector<8x256xf32>
    %cst_5 = arith.constant 0.000000e+00 : f32
    %7 = vector.broadcast %cst_5 : f32 to vector<8x256xf32>
    %8 = arith.maximumf %6, %7 : vector<8x256xf32>
    %9 = arith.truncf %8 : vector<8x256xf32> to vector<8x256xbf16>
    %c0_6 = arith.constant 0 : index
    %c0_7 = arith.constant 0 : index
    %10 = vector.load %arg4[%c0_6, %c0_7] : memref<256x256xbf16, #tpu.memory_space<vmem>>, vector<256x256xbf16>
    %cst_8 = arith.constant dense<0.000000e+00> : vector<8x256xf32>
    %11 = tpu.matmul %9, %10, %cst_8 {dimension_numbers = #tpu.dot_dimension_numbers<[1], [0], [0], [1], [0, 0, 1, 1], [], []>} : vector<8x256xbf16>, vector<256x256xbf16>, vector<8x256xf32> -> vector<8x256xf32>
    %c0_9 = arith.constant 0 : index
    %c0_10 = arith.constant 0 : index
    %12 = vector.load %arg5[%c0_9, %c0_10] : memref<1x256xf32, #tpu.memory_space<vmem>>, vector<1x256xf32>
    %13 = vector.broadcast %12 : vector<1x256xf32> to vector<8x256xf32>
    %14 = arith.addf %11, %13 : vector<8x256xf32>
    %cst_11 = arith.constant 0.000000e+00 : f32
    %15 = vector.broadcast %cst_11 : f32 to vector<8x256xf32>
    %16 = arith.maximumf %14, %15 : vector<8x256xf32>
    %17 = arith.truncf %16 : vector<8x256xf32> to vector<8x256xbf16>
    %c0_12 = arith.constant 0 : index
    %c0_13 = arith.constant 0 : index
    %18 = vector.load %arg6[%c0_12, %c0_13] : memref<256x256xbf16, #tpu.memory_space<vmem>>, vector<256x256xbf16>
    %cst_14 = arith.constant dense<0.000000e+00> : vector<8x256xf32>
    %19 = tpu.matmul %17, %18, %cst_14 {dimension_numbers = #tpu.dot_dimension_numbers<[1], [0], [0], [1], [0, 0, 1, 1], [], []>} : vector<8x256xbf16>, vector<256x256xbf16>, vector<8x256xf32> -> vector<8x256xf32>
    %c0_15 = arith.constant 0 : index
    %c0_16 = arith.constant 0 : index
    %20 = vector.load %arg7[%c0_15, %c0_16] : memref<1x256xf32, #tpu.memory_space<vmem>>, vector<1x256xf32>
    %21 = vector.broadcast %20 : vector<1x256xf32> to vector<8x256xf32>
    %22 = arith.addf %19, %21 : vector<8x256xf32>
    %cst_17 = arith.constant 0.000000e+00 : f32
    %23 = vector.broadcast %cst_17 : f32 to vector<8x256xf32>
    %24 = arith.maximumf %22, %23 : vector<8x256xf32>
    %25 = arith.truncf %24 : vector<8x256xf32> to vector<8x256xbf16>
    %c0_18 = arith.constant 0 : index
    %c0_19 = arith.constant 0 : index
    %26 = vector.load %arg8[%c0_18, %c0_19] : memref<256x256xbf16, #tpu.memory_space<vmem>>, vector<256x256xbf16>
    %cst_20 = arith.constant dense<0.000000e+00> : vector<8x256xf32>
    %27 = tpu.matmul %25, %26, %cst_20 {dimension_numbers = #tpu.dot_dimension_numbers<[1], [0], [0], [1], [0, 0, 1, 1], [], []>} : vector<8x256xbf16>, vector<256x256xbf16>, vector<8x256xf32> -> vector<8x256xf32>
    %c0_21 = arith.constant 0 : index
    %c0_22 = arith.constant 0 : index
    %28 = vector.load %arg9[%c0_21, %c0_22] : memref<1x256xf32, #tpu.memory_space<vmem>>, vector<1x256xf32>
    %29 = vector.broadcast %28 : vector<1x256xf32> to vector<8x256xf32>
    %30 = arith.addf %27, %29 : vector<8x256xf32>
    %31 = arith.addf %30, %16 : vector<8x256xf32>
    %cst_23 = arith.constant dense<0.000000e+00> : vector<8xf32>
    %32 = vector.multi_reduction <add>, %31, %cst_23 [1] : vector<8x256xf32> to vector<8xf32>
    %33 = vector.shape_cast %32 : vector<8xf32> to vector<8x1xf32>
    %cst_24 = arith.constant 2.560000e+02 : f32
    %34 = vector.broadcast %cst_24 : f32 to vector<8x1xf32>
    %35 = arith.divf %33, %34 : vector<8x1xf32>
    %36 = vector.broadcast %35 : vector<8x1xf32> to vector<8x256xf32>
    %37 = arith.subf %31, %36 : vector<8x256xf32>
    %38 = arith.mulf %37, %37 : vector<8x256xf32>
    %cst_25 = arith.constant dense<0.000000e+00> : vector<8xf32>
    %39 = vector.multi_reduction <add>, %38, %cst_25 [1] : vector<8x256xf32> to vector<8xf32>
    %40 = vector.shape_cast %39 : vector<8xf32> to vector<8x1xf32>
    %cst_26 = arith.constant 2.560000e+02 : f32
    %41 = vector.broadcast %cst_26 : f32 to vector<8x1xf32>
    %42 = arith.divf %40, %41 : vector<8x1xf32>
    %cst_27 = arith.constant 9.99999974E-6 : f32
    %43 = vector.broadcast %cst_27 : f32 to vector<8x1xf32>
    %44 = arith.addf %42, %43 : vector<8x1xf32>
    %45 = math.rsqrt %44 : vector<8x1xf32>
    %46 = vector.broadcast %45 : vector<8x1xf32> to vector<8x256xf32>
    %47 = arith.mulf %37, %46 : vector<8x256xf32>
    %c0_28 = arith.constant 0 : index
    %c0_29 = arith.constant 0 : index
    %48 = vector.load %arg10[%c0_28, %c0_29] : memref<1x256xf32, #tpu.memory_space<vmem>>, vector<1x256xf32>
    %49 = vector.broadcast %48 : vector<1x256xf32> to vector<8x256xf32>
    %50 = arith.mulf %47, %49 : vector<8x256xf32>
    %c0_30 = arith.constant 0 : index
    %c0_31 = arith.constant 0 : index
    %51 = vector.load %arg11[%c0_30, %c0_31] : memref<1x256xf32, #tpu.memory_space<vmem>>, vector<1x256xf32>
    %52 = vector.broadcast %51 : vector<1x256xf32> to vector<8x256xf32>
    %53 = arith.addf %50, %52 : vector<8x256xf32>
    %cst_32 = arith.constant 0.000000e+00 : f32
    %54 = vector.broadcast %cst_32 : f32 to vector<8x256xf32>
    %55 = arith.maximumf %53, %54 : vector<8x256xf32>
    %56 = arith.truncf %55 : vector<8x256xf32> to vector<8x256xbf16>
    %c0_33 = arith.constant 0 : index
    %c0_34 = arith.constant 0 : index
    %57 = vector.load %arg12[%c0_33, %c0_34] : memref<256x256xbf16, #tpu.memory_space<vmem>>, vector<256x256xbf16>
    %cst_35 = arith.constant dense<0.000000e+00> : vector<8x256xf32>
    %58 = tpu.matmul %56, %57, %cst_35 {dimension_numbers = #tpu.dot_dimension_numbers<[1], [0], [0], [1], [0, 0, 1, 1], [], []>} : vector<8x256xbf16>, vector<256x256xbf16>, vector<8x256xf32> -> vector<8x256xf32>
    %c0_36 = arith.constant 0 : index
    %c0_37 = arith.constant 0 : index
    %59 = vector.load %arg13[%c0_36, %c0_37] : memref<1x256xf32, #tpu.memory_space<vmem>>, vector<1x256xf32>
    %60 = vector.broadcast %59 : vector<1x256xf32> to vector<8x256xf32>
    %61 = arith.addf %58, %60 : vector<8x256xf32>
    %cst_38 = arith.constant 0.000000e+00 : f32
    %62 = vector.broadcast %cst_38 : f32 to vector<8x256xf32>
    %63 = arith.maximumf %61, %62 : vector<8x256xf32>
    %64 = arith.truncf %63 : vector<8x256xf32> to vector<8x256xbf16>
    %c0_39 = arith.constant 0 : index
    %c0_40 = arith.constant 0 : index
    %65 = vector.load %arg14[%c0_39, %c0_40] : memref<256x256xbf16, #tpu.memory_space<vmem>>, vector<256x256xbf16>
    %cst_41 = arith.constant dense<0.000000e+00> : vector<8x256xf32>
    %66 = tpu.matmul %64, %65, %cst_41 {dimension_numbers = #tpu.dot_dimension_numbers<[1], [0], [0], [1], [0, 0, 1, 1], [], []>} : vector<8x256xbf16>, vector<256x256xbf16>, vector<8x256xf32> -> vector<8x256xf32>
    %c0_42 = arith.constant 0 : index
    %c0_43 = arith.constant 0 : index
    %67 = vector.load %arg15[%c0_42, %c0_43] : memref<1x256xf32, #tpu.memory_space<vmem>>, vector<1x256xf32>
    %68 = vector.broadcast %67 : vector<1x256xf32> to vector<8x256xf32>
    %69 = arith.addf %66, %68 : vector<8x256xf32>
    %70 = arith.addf %69, %55 : vector<8x256xf32>
    %cst_44 = arith.constant dense<0.000000e+00> : vector<8xf32>
    %71 = vector.multi_reduction <add>, %70, %cst_44 [1] : vector<8x256xf32> to vector<8xf32>
    %72 = vector.shape_cast %71 : vector<8xf32> to vector<8x1xf32>
    %cst_45 = arith.constant 2.560000e+02 : f32
    %73 = vector.broadcast %cst_45 : f32 to vector<8x1xf32>
    %74 = arith.divf %72, %73 : vector<8x1xf32>
    %75 = vector.broadcast %74 : vector<8x1xf32> to vector<8x256xf32>
    %76 = arith.subf %70, %75 : vector<8x256xf32>
    %77 = arith.mulf %76, %76 : vector<8x256xf32>
    %cst_46 = arith.constant dense<0.000000e+00> : vector<8xf32>
    %78 = vector.multi_reduction <add>, %77, %cst_46 [1] : vector<8x256xf32> to vector<8xf32>
    %79 = vector.shape_cast %78 : vector<8xf32> to vector<8x1xf32>
    %cst_47 = arith.constant 2.560000e+02 : f32
    %80 = vector.broadcast %cst_47 : f32 to vector<8x1xf32>
    %81 = arith.divf %79, %80 : vector<8x1xf32>
    %cst_48 = arith.constant 9.99999974E-6 : f32
    %82 = vector.broadcast %cst_48 : f32 to vector<8x1xf32>
    %83 = arith.addf %81, %82 : vector<8x1xf32>
    %84 = math.rsqrt %83 : vector<8x1xf32>
    %85 = vector.broadcast %84 : vector<8x1xf32> to vector<8x256xf32>
    %86 = arith.mulf %76, %85 : vector<8x256xf32>
    %c0_49 = arith.constant 0 : index
    %c0_50 = arith.constant 0 : index
    %87 = vector.load %arg16[%c0_49, %c0_50] : memref<1x256xf32, #tpu.memory_space<vmem>>, vector<1x256xf32>
    %88 = vector.broadcast %87 : vector<1x256xf32> to vector<8x256xf32>
    %89 = arith.mulf %86, %88 : vector<8x256xf32>
    %c0_51 = arith.constant 0 : index
    %c0_52 = arith.constant 0 : index
    %90 = vector.load %arg17[%c0_51, %c0_52] : memref<1x256xf32, #tpu.memory_space<vmem>>, vector<1x256xf32>
    %91 = vector.broadcast %90 : vector<1x256xf32> to vector<8x256xf32>
    %92 = arith.addf %89, %91 : vector<8x256xf32>
    %cst_53 = arith.constant 0.000000e+00 : f32
    %93 = vector.broadcast %cst_53 : f32 to vector<8x256xf32>
    %94 = arith.maximumf %92, %93 : vector<8x256xf32>
    %95 = arith.truncf %94 : vector<8x256xf32> to vector<8x256xbf16>
    %c0_54 = arith.constant 0 : index
    %c0_55 = arith.constant 0 : index
    %96 = vector.load %arg18[%c0_54, %c0_55] : memref<256x256xbf16, #tpu.memory_space<vmem>>, vector<256x256xbf16>
    %cst_56 = arith.constant dense<0.000000e+00> : vector<8x256xf32>
    %97 = tpu.matmul %95, %96, %cst_56 {dimension_numbers = #tpu.dot_dimension_numbers<[1], [0], [0], [1], [0, 0, 1, 1], [], []>} : vector<8x256xbf16>, vector<256x256xbf16>, vector<8x256xf32> -> vector<8x256xf32>
    %c0_57 = arith.constant 0 : index
    %c0_58 = arith.constant 0 : index
    %98 = vector.load %arg19[%c0_57, %c0_58] : memref<1x256xf32, #tpu.memory_space<vmem>>, vector<1x256xf32>
    %99 = vector.broadcast %98 : vector<1x256xf32> to vector<8x256xf32>
    %100 = arith.addf %97, %99 : vector<8x256xf32>
    %cst_59 = arith.constant 0.000000e+00 : f32
    %101 = vector.broadcast %cst_59 : f32 to vector<8x256xf32>
    %102 = arith.maximumf %100, %101 : vector<8x256xf32>
    %103 = arith.truncf %102 : vector<8x256xf32> to vector<8x256xbf16>
    %c0_60 = arith.constant 0 : index
    %c0_61 = arith.constant 0 : index
    %104 = vector.load %arg20[%c0_60, %c0_61] : memref<256x128xbf16, #tpu.memory_space<vmem>>, vector<256x128xbf16>
    %cst_62 = arith.constant dense<0.000000e+00> : vector<8x128xf32>
    %105 = tpu.matmul %103, %104, %cst_62 {dimension_numbers = #tpu.dot_dimension_numbers<[1], [0], [0], [1], [0, 0, 1, 1], [], []>} : vector<8x256xbf16>, vector<256x128xbf16>, vector<8x128xf32> -> vector<8x128xf32>
    %c0_63 = arith.constant 0 : index
    %c0_64 = arith.constant 0 : index
    %106 = vector.load %arg21[%c0_63, %c0_64] : memref<1x128xf32, #tpu.memory_space<vmem>>, vector<1x128xf32>
    %107 = vector.broadcast %106 : vector<1x128xf32> to vector<8x128xf32>
    %108 = arith.addf %105, %107 : vector<8x128xf32>
    %c0_65 = arith.constant 0 : index
    %c0_66 = arith.constant 0 : index
    %109 = vector.load %arg22[%c0_65, %c0_66] : memref<8x128xf32, #tpu.memory_space<vmem>>, vector<8x128xf32>
    tpu.vector_store %arg22[%c0_65, %c0_66], %108 {strides = array<i32>} : memref<8x128xf32, #tpu.memory_space<vmem>>, vector<8x128xf32>,
    return
  }
  func.func @transform_0(%arg0: i32) -> (i32, i32) {
    %c0_i32 = arith.constant 0 : i32
    %c0_i32_0 = arith.constant 0 : i32
    return %arg0, %c0_i32 : i32, i32
  }
  func.func @transform_1(%arg0: i32) -> (i32, i32) {
    %c0_i32 = arith.constant 0 : i32
    %c0_i32_0 = arith.constant 0 : i32
    %c0_i32_1 = arith.constant 0 : i32
    return %c0_i32, %c0_i32_0 : i32, i32
  }
  func.func @transform_2(%arg0: i32) -> (i32, i32) {
    %c0_i32 = arith.constant 0 : i32
    %c0_i32_0 = arith.constant 0 : i32
    %c0_i32_1 = arith.constant 0 : i32
    return %c0_i32, %c0_i32_0 : i32, i32
  }
  func.func @transform_3(%arg0: i32) -> (i32, i32) {
    %c0_i32 = arith.constant 0 : i32
    %c0_i32_0 = arith.constant 0 : i32
    %c0_i32_1 = arith.constant 0 : i32
    return %c0_i32, %c0_i32_0 : i32, i32
  }
  func.func @transform_4(%arg0: i32) -> (i32, i32) {
    %c0_i32 = arith.constant 0 : i32
    %c0_i32_0 = arith.constant 0 : i32
    %c0_i32_1 = arith.constant 0 : i32
    return %c0_i32, %c0_i32_0 : i32, i32
  }
  func.func @transform_5(%arg0: i32) -> (i32, i32) {
    %c0_i32 = arith.constant 0 : i32
    %c0_i32_0 = arith.constant 0 : i32
    %c0_i32_1 = arith.constant 0 : i32
    return %c0_i32, %c0_i32_0 : i32, i32
  }
  func.func @transform_6(%arg0: i32) -> (i32, i32) {
    %c0_i32 = arith.constant 0 : i32
    %c0_i32_0 = arith.constant 0 : i32
    %c0_i32_1 = arith.constant 0 : i32
    return %c0_i32, %c0_i32_0 : i32, i32
  }
  func.func @transform_7(%arg0: i32) -> (i32, i32) {
    %c0_i32 = arith.constant 0 : i32
    %c0_i32_0 = arith.constant 0 : i32
    %c0_i32_1 = arith.constant 0 : i32
    return %c0_i32, %c0_i32_0 : i32, i32
  }
  func.func @transform_8(%arg0: i32) -> (i32, i32) {
    %c0_i32 = arith.constant 0 : i32
    %c0_i32_0 = arith.constant 0 : i32
    %c0_i32_1 = arith.constant 0 : i32
    return %c0_i32, %c0_i32_0 : i32, i32
  }
  func.func @transform_9(%arg0: i32) -> (i32, i32) {
    %c0_i32 = arith.constant 0 : i32
    %c0_i32_0 = arith.constant 0 : i32
    %c0_i32_1 = arith.constant 0 : i32
    return %c0_i32, %c0_i32_0 : i32, i32
  }
  func.func @transform_10(%arg0: i32) -> (i32, i32) {
    %c0_i32 = arith.constant 0 : i32
    %c0_i32_0 = arith.constant 0 : i32
    %c0_i32_1 = arith.constant 0 : i32
    return %c0_i32, %c0_i32_0 : i32, i32
  }
  func.func @transform_11(%arg0: i32) -> (i32, i32) {
    %c0_i32 = arith.constant 0 : i32
    %c0_i32_0 = arith.constant 0 : i32
    %c0_i32_1 = arith.constant 0 : i32
    return %c0_i32, %c0_i32_0 : i32, i32
  }
  func.func @transform_12(%arg0: i32) -> (i32, i32) {
    %c0_i32 = arith.constant 0 : i32
    %c0_i32_0 = arith.constant 0 : i32
    %c0_i32_1 = arith.constant 0 : i32
    return %c0_i32, %c0_i32_0 : i32, i32
  }
  func.func @transform_13(%arg0: i32) -> (i32, i32) {
    %c0_i32 = arith.constant 0 : i32
    %c0_i32_0 = arith.constant 0 : i32
    %c0_i32_1 = arith.constant 0 : i32
    return %c0_i32, %c0_i32_0 : i32, i32
  }
  func.func @transform_14(%arg0: i32) -> (i32, i32) {
    %c0_i32 = arith.constant 0 : i32
    %c0_i32_0 = arith.constant 0 : i32
    %c0_i32_1 = arith.constant 0 : i32
    return %c0_i32, %c0_i32_0 : i32, i32
  }
  func.func @transform_15(%arg0: i32) -> (i32, i32) {
    %c0_i32 = arith.constant 0 : i32
    %c0_i32_0 = arith.constant 0 : i32
    %c0_i32_1 = arith.constant 0 : i32
    return %c0_i32, %c0_i32_0 : i32, i32
  }
  func.func @transform_16(%arg0: i32) -> (i32, i32) {
    %c0_i32 = arith.constant 0 : i32
    %c0_i32_0 = arith.constant 0 : i32
    %c0_i32_1 = arith.constant 0 : i32
    return %c0_i32, %c0_i32_0 : i32, i32
  }
  func.func @transform_17(%arg0: i32) -> (i32, i32) {
    %c0_i32 = arith.constant 0 : i32
    %c0_i32_0 = arith.constant 0 : i32
    %c0_i32_1 = arith.constant 0 : i32
    return %c0_i32, %c0_i32_0 : i32, i32
  }
  func.func @transform_18(%arg0: i32) -> (i32, i32) {
    %c0_i32 = arith.constant 0 : i32
    %c0_i32_0 = arith.constant 0 : i32
    %c0_i32_1 = arith.constant 0 : i32
    return %c0_i32, %c0_i32_0 : i32, i32
  }
  func.func @transform_19(%arg0: i32) -> (i32, i32) {
    %c0_i32 = arith.constant 0 : i32
    %c0_i32_0 = arith.constant 0 : i32
    %c0_i32_1 = arith.constant 0 : i32
    return %c0_i32, %c0_i32_0 : i32, i32
  }
  func.func @transform_20(%arg0: i32) -> (i32, i32) {
    %c0_i32 = arith.constant 0 : i32
    %c0_i32_0 = arith.constant 0 : i32
    %c0_i32_1 = arith.constant 0 : i32
    return %c0_i32, %c0_i32_0 : i32, i32
  }
  func.func @transform_21(%arg0: i32) -> (i32, i32) {
    %c0_i32 = arith.constant 0 : i32
    %c0_i32_0 = arith.constant 0 : i32
    return %arg0, %c0_i32 : i32, i32
  }
}

</mosaic_0001>

<bundles_post_ra>
// kernel: _forward_padded.1
= control target key start
LH: loop header
LB: loop body
LE: loop exit
PB: predicated region body
PF: predicated region fallthrough
CT: control target
= control target key end

     0   :  { %s3578_s0 = inlined_call_operand.hbm [shape: f32[8,64], index: 0, kind: input, shape index: {}]   ;;  %s3579_s1 = inlined_call_operand.vmem [shape: bf16[64,256], index: 1, kind: input, shape index: {}]   ;;  %s3580_s2 = inlined_call_operand.vmem [shape: f32[1,256], index: 2, kind: input, shape index: {}]   ;;  %s3581_s3 = inlined_call_operand.hbm [shape: bf16[256,256], index: 3, kind: input, shape index: {}]   ;;  %s3582_s4 = inlined_call_operand.vmem [shape: f32[1,256], index: 4, kind: input, shape index: {}]   ;;  %s3583_s5 = inlined_call_operand.hbm [shape: bf16[256,256], index: 5, kind: input, shape index: {}]   ;;  %s3584_s6 = inlined_call_operand.vmem [shape: f32[1,256], index: 6, kind: input, shape index: {}]   ;;  %s3585_s7 = inlined_call_operand.hbm [shape: bf16[256,256], index: 7, kind: input, shape index: {}]   ;;  %s3586_s8 = inlined_call_operand.hbm [shape: f32[1,256], index: 8, kind: input, shape index: {}]   ;;  %s3587_s9 = inlined_call_operand.hbm [shape: f32[1,256], index: 9, kind: input, shape index: {}]   ;;  %s3588_s10 = inlined_call_operand.hbm [shape: f32[1,256], index: 10, kind: input, shape index: {}]   ;;  %s3589_s11 = inlined_call_operand.hbm [shape: bf16[256,256], index: 11, kind: input, shape index: {}]   ;;  %s3590_s12 = inlined_call_operand.hbm [shape: f32[1,256], index: 12, kind: input, shape index: {}]   ;;  %s3591_s13 = inlined_call_operand.hbm [shape: bf16[256,256], index: 13, kind: input, shape index: {}]   ;;  %s3592_s14 = inlined_call_operand.hbm [shape: f32[1,256], index: 14, kind: input, shape index: {}]   ;;  %s3593_s15 = inlined_call_operand.hbm [shape: f32[1,256], index: 15, kind: input, shape index: {}]   ;;  %s3594_s16 = inlined_call_operand.hbm [shape: f32[1,256], index: 16, kind: input, shape index: {}]   ;;  %s3595_s17 = inlined_call_operand.hbm [shape: bf16[256,256], index: 17, kind: input, shape index: {}]   ;;  %s3596_s18 = inlined_call_operand.hbm [shape: f32[1,256], index: 18, kind: input, shape index: {}]   ;;  %s3597_s19 = inlined_call_operand.hbm [shape: bf16[256,128], index: 19, kind: input, shape index: {}]   ;;  %s3598_s20 = inlined_call_operand.vmem [shape: f32[1,128], index: 20, kind: input, shape index: {}]   ;;  %s3599_s21 = inlined_call_operand.hbm [shape: f32[8,128], index: 21, kind: output, shape index: {}]  }
   0x1   :  { %3605 = sst [smem:[#allocation39_spill]] %s3578_s0 }
   0x2   :  { %3606 = sst [smem:[#allocation40_spill]] %s3579_s1 }
   0x3   :  { %3607 = sst [smem:[#allocation41_spill]] %s3580_s2 }
   0x4   :  { %3608 = sst [smem:[#allocation42_spill]] %s3581_s3 }
   0x5   :  { %3609 = sst [smem:[#allocation43_spill]] %s3582_s4 }
   0x6   :  { %3610 = sst [smem:[#allocation44_spill]] %s3583_s5 }
   0x7   :  { %3611 = sst [smem:[#allocation45_spill]] %s3598_s20 }
   0x8   :  { %3612 = sst [smem:[#allocation46_spill]] %s3599_s21 }
   0x9   :  { %26 = vsyncpa [#allocation3], 0 }
   0xa   :  { %27 = vsyncpa [#allocation6], 0 }
   0xb   :  { %28 = vsyncpa [#allocation9], 0 }
   0xc   :  { %29 = vsyncpa [#allocation12], 0 }
   0xd   :  { %30 = vsyncpa [#allocation15], 0 }
   0xe   :  { %31 = vsyncpa [#allocation18], 0 }
   0xf   :  { %32 = vsyncpa [#allocation21], 0 }
  0x10   :  { %33 = vsyncpa [#allocation24], 0 }
  0x11   :  { %34 = vsyncpa [#allocation27], 0 }
  0x12   :  { %35 = vsyncpa [#allocation4], 0  ;;  %s3142_s2 = smov [#allocation5]   ;;  %s3613_s3 = sld [smem:[#allocation42_spill]] }
  0x13   :  { %s55_s25 = sshll.u32 %s3142_s2, 4  ;;  %s56_s25 = int_to_ptr.vmem [resolvable:$true] %s55_s25 }
  0x18   :  { %s2748_s28 = scalar_lea.hbm %s3613_s3, 4096 }
  0x19   :  { %p2749_p0 = scmp.ne.s32.totalorder %s3613_s3, %s2748_s28  ;;  %p2752_p1 = scmp.lt.u32.totalorder %s2748_s28, %s3613_s3 }
  0x1b   :  { %p2754_p2 = pnand %p2752_p1, %p2749_p0 }
  0x1d   :  { %2757 = shalt.err (!%p2754_p2)
}
  0x1e   :  { %s2758_s5 = scalar_lea.vmem %s56_s25, 4096  ;;  %p2763_p4 = scmp.lt.s32.totalorder %s56_s25, %s56_s25 }
  0x1f   :  { %p2759_p3 = scmp.ne.s32.totalorder %s56_s25, %s2758_s5  ;;  %p2764_p5 = scmp.lt.s32.totalorder %s2758_s5, %s2758_s5 }
  0x21   :  { %p2765_p6 = por %p2764_p5, %p2763_p4 }
  0x23   :  { %p2766_p7 = pnand %p2765_p6, %p2759_p3 }
  0x25   :  { %2769 = shalt.err (!%p2766_p7)
}
  0x26   :  { %s3143_s22 = smov 128   ;;  %s3144_s23 = smov 8  }
  0x27   :  { %61 = dma.hbm_to_vmem [thread:$0]  %s3613_s3, 4096, %s56_s25, [#allocation6], %s3143_s22, %s3143_s22, %s3144_s23  }
  0x28   :  { %s3145_s2 = smov [#allocation8]   ;;  %s3146_s27 = smov [#allocation11]  }
  0x29   :  { %s83_s26 = sshll.u32 %s3145_s2, 4  ;;  %s106_s28 = sshll.u32 %s3146_s27, 4  ;;  %s84_s26 = int_to_ptr.vmem [resolvable:$true] %s83_s26  ;;  %s107_s28 = int_to_ptr.vmem [resolvable:$true] %s106_s28 }
  0x2a   :  { %s2770_s4 = scalar_lea.hbm %s3585_s7, 4096 }
  0x2b   :  { %p2771_p8 = scmp.ne.s32.totalorder %s3585_s7, %s2770_s4  ;;  %p2774_p9 = scmp.lt.u32.totalorder %s2770_s4, %s3585_s7 }
  0x2d   :  { %p2776_p10 = pnand %p2774_p9, %p2771_p8 }
  0x2f   :  { %2779 = shalt.err (!%p2776_p10)
}
  0x30   :  { %s2780_s25 = scalar_lea.vmem %s84_s26, 4096  ;;  %p2785_p12 = scmp.lt.s32.totalorder %s84_s26, %s84_s26 }
  0x31   :  { %p2781_p11 = scmp.ne.s32.totalorder %s84_s26, %s2780_s25  ;;  %p2786_p13 = scmp.lt.s32.totalorder %s2780_s25, %s2780_s25 }
  0x33   :  { %p2787_p0 = por %p2786_p13, %p2785_p12 }
  0x35   :  { %p2788_p1 = pnand %p2787_p0, %p2781_p11 }
  0x37   :  { %2791 = shalt.err (!%p2788_p1)
}
  0x38   :  { %89 = dma.hbm_to_vmem [thread:$0]  %s3585_s7, 4096, %s84_s26, [#allocation9], %s3143_s22, %s3143_s22, %s3144_s23  }
  0x39   :  { %s2792_s21 = scalar_lea.hbm %s3587_s9, 32 }
  0x3a   :  { %p2793_p2 = scmp.ne.s32.totalorder %s3587_s9, %s2792_s21  ;;  %p2796_p3 = scmp.lt.u32.totalorder %s2792_s21, %s3587_s9 }
  0x3c   :  { %p2798_p4 = pnand %p2796_p3, %p2793_p2 }
  0x3e   :  { %2801 = shalt.err (!%p2798_p4)
}
  0x3f   :  { %s2802_s4 = scalar_lea.vmem %s107_s28, 32  ;;  %p2807_p6 = scmp.lt.s32.totalorder %s107_s28, %s107_s28 }
  0x40   :  { %p2803_p5 = scmp.ne.s32.totalorder %s107_s28, %s2802_s4  ;;  %p2808_p7 = scmp.lt.s32.totalorder %s2802_s4, %s2802_s4 }
  0x42   :  { %p2809_p8 = por %p2808_p7, %p2807_p6 }
  0x44   :  { %p2810_p9 = pnand %p2809_p8, %p2803_p5 }
  0x46   :  { %2813 = shalt.err (!%p2810_p9)
}
  0x47   :  { %109 = dma.hbm_to_vmem [thread:$0]  %s3587_s9, 32, %s107_s28, [#allocation12]  }
  0x48   :  { %s3147_s30 = smov [#allocation14]   ;;  %s3148_s25 = smov [#allocation17]  }
  0x49   :  { %s125_s5 = sshll.u32 %s3147_s30, 4  ;;  %s147_s3 = sshll.u32 %s3148_s25, 4  ;;  %s126_s5 = int_to_ptr.vmem [resolvable:$true] %s125_s5  ;;  %s148_s3 = int_to_ptr.vmem [resolvable:$true] %s147_s3 }
  0x4a   :  { %s2814_s20 = scalar_lea.hbm %s3589_s11, 4096 }
  0x4b   :  { %p2815_p10 = scmp.ne.s32.totalorder %s3589_s11, %s2814_s20  ;;  %p2818_p11 = scmp.lt.u32.totalorder %s2814_s20, %s3589_s11 }
  0x4d   :  { %p2820_p12 = pnand %p2818_p11, %p2815_p10 }
  0x4f   :  { %2823 = shalt.err (!%p2820_p12)
}
  0x50   :  { %s2824_s9 = scalar_lea.vmem %s126_s5, 4096  ;;  %p2829_p0 = scmp.lt.s32.totalorder %s126_s5, %s126_s5 }
  0x51   :  { %p2825_p13 = scmp.ne.s32.totalorder %s126_s5, %s2824_s9  ;;  %p2830_p1 = scmp.lt.s32.totalorder %s2824_s9, %s2824_s9 }
  0x53   :  { %p2831_p2 = por %p2830_p1, %p2829_p0 }
  0x55   :  { %p2832_p3 = pnand %p2831_p2, %p2825_p13 }
  0x57   :  { %2835 = shalt.err (!%p2832_p3)
}
  0x58   :  { %131 = dma.hbm_to_vmem [thread:$0]  %s3589_s11, 4096, %s126_s5, [#allocation15], %s3143_s22, %s3143_s22, %s3144_s23  }
  0x59   :  { %s2836_s26 = scalar_lea.hbm %s3591_s13, 4096 }
  0x5a   :  { %p2837_p4 = scmp.ne.s32.totalorder %s3591_s13, %s2836_s26  ;;  %p2840_p5 = scmp.lt.u32.totalorder %s2836_s26, %s3591_s13 }
  0x5c   :  { %p2842_p6 = pnand %p2840_p5, %p2837_p4 }
  0x5e   :  { %2845 = shalt.err (!%p2842_p6)
}
  0x5f   :  { %s2846_s20 = scalar_lea.vmem %s148_s3, 4096  ;;  %p2851_p8 = scmp.lt.s32.totalorder %s148_s3, %s148_s3 }
  0x60   :  { %p2847_p7 = scmp.ne.s32.totalorder %s148_s3, %s2846_s20  ;;  %p2852_p9 = scmp.lt.s32.totalorder %s2846_s20, %s2846_s20 }
  0x62   :  { %p2853_p10 = por %p2852_p9, %p2851_p8 }
  0x64   :  { %p2854_p11 = pnand %p2853_p10, %p2847_p7 }
  0x66   :  { %2857 = shalt.err (!%p2854_p11)
}
  0x67   :  { %153 = dma.hbm_to_vmem [thread:$0]  %s3591_s13, 4096, %s148_s3, [#allocation18], %s3143_s22, %s3143_s22, %s3144_s23  }
  0x68   :  { %s3149_s21 = smov [#allocation20]   ;;  %s3150_s27 = smov [#allocation23]  }
  0x69   :  { %s170_s2 = sshll.u32 %s3149_s21, 4  ;;  %s189_s29 = sshll.u32 %s3150_s27, 4  ;;  %s171_s2 = int_to_ptr.vmem [resolvable:$true] %s170_s2  ;;  %s190_s29 = int_to_ptr.vmem [resolvable:$true] %s189_s29 }
  0x6a   :  { %s2858_s0 = scalar_lea.hbm %s3593_s15, 32 }
  0x6b   :  { %p2859_p12 = scmp.ne.s32.totalorder %s3593_s15, %s2858_s0  ;;  %p2862_p13 = scmp.lt.u32.totalorder %s2858_s0, %s3593_s15 }
  0x6d   :  { %p2864_p0 = pnand %p2862_p13, %p2859_p12 }
  0x6f   :  { %2867 = shalt.err (!%p2864_p0)
}
  0x70   :  { %s2868_s13 = scalar_lea.vmem %s171_s2, 32  ;;  %p2873_p2 = scmp.lt.s32.totalorder %s171_s2, %s171_s2 }
  0x71   :  { %p2869_p1 = scmp.ne.s32.totalorder %s171_s2, %s2868_s13  ;;  %p2874_p3 = scmp.lt.s32.totalorder %s2868_s13, %s2868_s13 }
  0x73   :  { %p2875_p4 = por %p2874_p3, %p2873_p2 }
  0x75   :  { %p2876_p5 = pnand %p2875_p4, %p2869_p1 }
  0x77   :  { %2879 = shalt.err (!%p2876_p5)
}
  0x78   :  { %173 = dma.hbm_to_vmem [thread:$0]  %s3593_s15, 32, %s171_s2, [#allocation21]  }
  0x79   :  { %s2880_s20 = scalar_lea.hbm %s3595_s17, 4096 }
  0x7a   :  { %p2881_p6 = scmp.ne.s32.totalorder %s3595_s17, %s2880_s20  ;;  %p2884_p7 = scmp.lt.u32.totalorder %s2880_s20, %s3595_s17 }
  0x7c   :  { %p2886_p8 = pnand %p2884_p7, %p2881_p6 }
  0x7e   :  { %2889 = shalt.err (!%p2886_p8)
}
  0x7f   :  { %s2890_s9 = scalar_lea.vmem %s190_s29, 4096  ;;  %p2895_p10 = scmp.lt.s32.totalorder %s190_s29, %s190_s29 }
  0x80   :  { %p2891_p9 = scmp.ne.s32.totalorder %s190_s29, %s2890_s9  ;;  %p2896_p11 = scmp.lt.s32.totalorder %s2890_s9, %s2890_s9 }
  0x82   :  { %p2897_p12 = por %p2896_p11, %p2895_p10 }
  0x84   :  { %p2898_p13 = pnand %p2897_p12, %p2891_p9 }
  0x86   :  { %2901 = shalt.err (!%p2898_p13)
}
  0x87   :  { %195 = dma.hbm_to_vmem [thread:$0]  %s3595_s17, 4096, %s190_s29, [#allocation24], %s3143_s22, %s3143_s22, %s3144_s23  }
  0x88   :  { %s3151_s28 = smov [#allocation2]   ;;  %s3152_s4 = smov [#allocation7]  }
  0x89   :  { %s42_s0 = sshll.u32 %s3151_s28, 4  ;;  %s69_s7 = sshll.u32 %s3152_s4, 4  ;;  %s43_s0 = int_to_ptr.vmem [resolvable:$true] %s42_s0  ;;  %s70_s7 = int_to_ptr.vmem [resolvable:$true] %s69_s7 }
  0x8a   :  { %s3614_s13 = sld [smem:[#allocation39_spill]] }
  0x90   :  { %s2902_s3 = scalar_lea.hbm %s3614_s13, 128 }
  0x91   :  { %p2903_p0 = scmp.ne.s32.totalorder %s3614_s13, %s2902_s3  ;;  %p2906_p1 = scmp.lt.u32.totalorder %s2902_s3, %s3614_s13 }
  0x93   :  { %p2908_p2 = pnand %p2906_p1, %p2903_p0 }
  0x95   :  { %2911 = shalt.err (!%p2908_p2)
}
  0x96   :  { %s2912_s17 = scalar_lea.vmem %s43_s0, 128  ;;  %p2917_p4 = scmp.lt.s32.totalorder %s43_s0, %s43_s0 }
  0x97   :  { %p2913_p3 = scmp.ne.s32.totalorder %s43_s0, %s2912_s17  ;;  %p2918_p5 = scmp.lt.s32.totalorder %s2912_s17, %s2912_s17 }
  0x99   :  { %p2919_p6 = por %p2918_p5, %p2917_p4 }
  0x9b   :  { %p2920_p7 = pnand %p2919_p6, %p2913_p3 }
  0x9d   :  { %2923 = shalt.err (!%p2920_p7)
}
  0x9e   :  { %45 = dma.hbm_to_vmem [thread:$0]  %s3614_s13, 128, %s43_s0, [#allocation3]  }
  0x9f   :  { %s3615_s27 = sld [smem:[#allocation44_spill]] }
  0xa5   :  { %s2924_s9 = scalar_lea.hbm %s3615_s27, 4096 }
  0xa6   :  { %p2925_p8 = scmp.ne.s32.totalorder %s3615_s27, %s2924_s9  ;;  %p2928_p9 = scmp.lt.u32.totalorder %s2924_s9, %s3615_s27 }
  0xa8   :  { %p2930_p10 = pnand %p2928_p9, %p2925_p8 }
  0xaa   :  { %2933 = shalt.err (!%p2930_p10)
}
  0xab   :  { %s2934_s26 = scalar_lea.vmem %s70_s7, 4096  ;;  %p2939_p12 = scmp.lt.s32.totalorder %s70_s7, %s70_s7 }
  0xac   :  { %p2935_p11 = scmp.ne.s32.totalorder %s70_s7, %s2934_s26  ;;  %p2940_p13 = scmp.lt.s32.totalorder %s2934_s26, %s2934_s26 }
  0xae   :  { %p2941_p0 = por %p2940_p13, %p2939_p12 }
  0xb0   :  { %p2942_p1 = pnand %p2941_p0, %p2935_p11 }
  0xb2   :  { %2945 = shalt.err (!%p2942_p1)
}
  0xb3   :  { %75 = dma.hbm_to_vmem [thread:$0]  %s3615_s27, 4096, %s70_s7, [#allocation6], %s3143_s22, %s3143_s22, %s3144_s23  }
  0xb4   :  { %s3153_s13 = smov [#allocation10]   ;;  %s3154_s25 = smov [#allocation13]  }
  0xb5   :  { %s96_s3 = sshll.u32 %s3153_s13, 4  ;;  %s116_s1 = sshll.u32 %s3154_s25, 4  ;;  %s97_s3 = int_to_ptr.vmem [resolvable:$true] %s96_s3  ;;  %s117_s1 = int_to_ptr.vmem [resolvable:$true] %s116_s1 }
  0xb6   :  { %s2946_s17 = scalar_lea.hbm %s3586_s8, 32 }
  0xb7   :  { %p2947_p2 = scmp.ne.s32.totalorder %s3586_s8, %s2946_s17  ;;  %p2950_p3 = scmp.lt.u32.totalorder %s2946_s17, %s3586_s8 }
  0xb9   :  { %p2952_p4 = pnand %p2950_p3, %p2947_p2 }
  0xbb   :  { %2955 = shalt.err (!%p2952_p4)
}
  0xbc   :  { %s2956_s22 = scalar_lea.vmem %s97_s3, 32  ;;  %p2961_p6 = scmp.lt.s32.totalorder %s97_s3, %s97_s3 }
  0xbd   :  { %p2957_p5 = scmp.ne.s32.totalorder %s97_s3, %s2956_s22  ;;  %p2962_p7 = scmp.lt.s32.totalorder %s2956_s22, %s2956_s22 }
  0xbf   :  { %p2963_p8 = por %p2962_p7, %p2961_p6 }
  0xc1   :  { %p2964_p9 = pnand %p2963_p8, %p2957_p5 }
  0xc3   :  { %2967 = shalt.err (!%p2964_p9)
}
  0xc4   :  { %99 = dma.hbm_to_vmem [thread:$0]  %s3586_s8, 32, %s97_s3, [#allocation9]  }
  0xc5   :  { %s2968_s15 = scalar_lea.hbm %s3588_s10, 32 }
  0xc6   :  { %p2969_p10 = scmp.ne.s32.totalorder %s3588_s10, %s2968_s15  ;;  %p2972_p11 = scmp.lt.u32.totalorder %s2968_s15, %s3588_s10 }
  0xc8   :  { %p2974_p12 = pnand %p2972_p11, %p2969_p10 }
  0xca   :  { %2977 = shalt.err (!%p2974_p12)
}
  0xcb   :  { %s2978_s0 = scalar_lea.vmem %s117_s1, 32  ;;  %p2983_p0 = scmp.lt.s32.totalorder %s117_s1, %s117_s1 }
  0xcc   :  { %p2979_p13 = scmp.ne.s32.totalorder %s117_s1, %s2978_s0  ;;  %p2984_p1 = scmp.lt.s32.totalorder %s2978_s0, %s2978_s0 }
  0xce   :  { %p2985_p2 = por %p2984_p1, %p2983_p0 }
  0xd0   :  { %p2986_p3 = pnand %p2985_p2, %p2979_p13 }
  0xd2   :  { %2989 = shalt.err (!%p2986_p3)
}
  0xd3   :  { %119 = dma.hbm_to_vmem [thread:$0]  %s3588_s10, 32, %s117_s1, [#allocation12]  }
  0xd4   :  { %s3155_s13 = smov [#allocation16]   ;;  %s3156_s25 = smov [#allocation19]  }
  0xd5   :  { %s138_s3 = sshll.u32 %s3155_s13, 4  ;;  %s160_s24 = sshll.u32 %s3156_s25, 4  ;;  %s139_s3 = int_to_ptr.vmem [resolvable:$true] %s138_s3  ;;  %s161_s24 = int_to_ptr.vmem [resolvable:$true] %s160_s24 }
  0xd6   :  { %s2990_s29 = scalar_lea.hbm %s3590_s12, 32 }
  0xd7   :  { %p2991_p4 = scmp.ne.s32.totalorder %s3590_s12, %s2990_s29  ;;  %p2994_p5 = scmp.lt.u32.totalorder %s2990_s29, %s3590_s12 }
  0xd9   :  { %p2996_p6 = pnand %p2994_p5, %p2991_p4 }
  0xdb   :  { %2999 = shalt.err (!%p2996_p6)
}
  0xdc   :  { %s3000_s10 = scalar_lea.vmem %s139_s3, 32  ;;  %p3005_p8 = scmp.lt.s32.totalorder %s139_s3, %s139_s3 }
  0xdd   :  { %p3001_p7 = scmp.ne.s32.totalorder %s139_s3, %s3000_s10  ;;  %p3006_p9 = scmp.lt.s32.totalorder %s3000_s10, %s3000_s10 }
  0xdf   :  { %p3007_p10 = por %p3006_p9, %p3005_p8 }
  0xe1   :  { %p3008_p11 = pnand %p3007_p10, %p3001_p7 }
  0xe3   :  { %3011 = shalt.err (!%p3008_p11)
}
  0xe4   :  { %141 = dma.hbm_to_vmem [thread:$0]  %s3590_s12, 32, %s139_s3, [#allocation15]  }
  0xe5   :  { %s3012_s9 = scalar_lea.hbm %s3592_s14, 32 }
  0xe6   :  { %p3013_p12 = scmp.ne.s32.totalorder %s3592_s14, %s3012_s9  ;;  %p3016_p13 = scmp.lt.u32.totalorder %s3012_s9, %s3592_s14 }
  0xe8   :  { %p3018_p0 = pnand %p3016_p13, %p3013_p12 }
  0xea   :  { %3021 = shalt.err (!%p3018_p0)
}
  0xeb   :  { %s3022_s26 = scalar_lea.vmem %s161_s24, 32  ;;  %p3027_p2 = scmp.lt.s32.totalorder %s161_s24, %s161_s24 }
  0xec   :  { %p3023_p1 = scmp.ne.s32.totalorder %s161_s24, %s3022_s26  ;;  %p3028_p3 = scmp.lt.s32.totalorder %s3022_s26, %s3022_s26 }
  0xee   :  { %p3029_p4 = por %p3028_p3, %p3027_p2 }
  0xf0   :  { %p3030_p5 = pnand %p3029_p4, %p3023_p1 }
  0xf2   :  { %3033 = shalt.err (!%p3030_p5)
}
  0xf3   :  { %163 = dma.hbm_to_vmem [thread:$0]  %s3592_s14, 32, %s161_s24, [#allocation18]  }
  0xf4   :  { %s3157_s8 = smov [#allocation22]   ;;  %s3158_s13 = smov [#allocation25]  }
  0xf5   :  { %s180_s30 = sshll.u32 %s3157_s8, 4  ;;  %s202_s3 = sshll.u32 %s3158_s13, 4  ;;  %s181_s30 = int_to_ptr.vmem [resolvable:$true] %s180_s30  ;;  %s203_s3 = int_to_ptr.vmem [resolvable:$true] %s202_s3 }
  0xf6   :  { %s3034_s17 = scalar_lea.hbm %s3594_s16, 32 }
  0xf7   :  { %p3035_p6 = scmp.ne.s32.totalorder %s3594_s16, %s3034_s17  ;;  %p3038_p7 = scmp.lt.u32.totalorder %s3034_s17, %s3594_s16 }
  0xf9   :  { %p3040_p8 = pnand %p3038_p7, %p3035_p6 }
  0xfb   :  { %3043 = shalt.err (!%p3040_p8)
}
  0xfc   :  { %s3044_s14 = scalar_lea.vmem %s181_s30, 32  ;;  %p3049_p10 = scmp.lt.s32.totalorder %s181_s30, %s181_s30 }
  0xfd   :  { %p3045_p9 = scmp.ne.s32.totalorder %s181_s30, %s3044_s14  ;;  %p3050_p11 = scmp.lt.s32.totalorder %s3044_s14, %s3044_s14 }
  0xff   :  { %p3051_p12 = por %p3050_p11, %p3049_p10 }
 0x101   :  { %p3052_p13 = pnand %p3051_p12, %p3045_p9 }
 0x103   :  { %3055 = shalt.err (!%p3052_p13)
}
 0x104   :  { %183 = dma.hbm_to_vmem [thread:$0]  %s3594_s16, 32, %s181_s30, [#allocation21]  }
 0x105   :  { %s3056_s23 = scalar_lea.hbm %s3596_s18, 32 }
 0x106   :  { %p3057_p0 = scmp.ne.s32.totalorder %s3596_s18, %s3056_s23  ;;  %p3060_p1 = scmp.lt.u32.totalorder %s3056_s23, %s3596_s18 }
 0x108   :  { %p3062_p2 = pnand %p3060_p1, %p3057_p0 }
 0x10a   :  { %3065 = shalt.err (!%p3062_p2)
}
 0x10b   :  { %s3066_s2 = scalar_lea.vmem %s203_s3, 32  ;;  %p3071_p4 = scmp.lt.s32.totalorder %s203_s3, %s203_s3 }
 0x10c   :  { %p3067_p3 = scmp.ne.s32.totalorder %s203_s3, %s3066_s2  ;;  %p3072_p5 = scmp.lt.s32.totalorder %s3066_s2, %s3066_s2 }
 0x10e   :  { %p3073_p6 = por %p3072_p5, %p3071_p4 }
 0x110   :  { %p3074_p7 = pnand %p3073_p6, %p3067_p3 }
 0x112   :  { %3077 = shalt.err (!%p3074_p7)
}
 0x113   :  { %205 = dma.hbm_to_vmem [thread:$0]  %s3596_s18, 32, %s203_s3, [#allocation24]  }
 0x114   :  { %s3159_s4 = smov [#allocation26]   ;;  %s3078_s8 = scalar_lea.hbm %s3597_s19, 2048 }
 0x115   :  { %s211_s26 = sshll.u32 %s3159_s4, 4  ;;  %p3079_p8 = scmp.ne.s32.totalorder %s3597_s19, %s3078_s8  ;;  %s212_s26 = int_to_ptr.vmem [resolvable:$true] %s211_s26 }
 0x116   :  { %p3082_p9 = scmp.lt.u32.totalorder %s3078_s8, %s3597_s19 }
 0x118   :  { %p3084_p10 = pnand %p3082_p9, %p3079_p8 }
 0x11a   :  { %3087 = shalt.err (!%p3084_p10)
}
 0x11b   :  { %s3088_s17 = scalar_lea.vmem %s212_s26, 2048  ;;  %p3093_p12 = scmp.lt.s32.totalorder %s212_s26, %s212_s26 }
 0x11c   :  { %p3089_p11 = scmp.ne.s32.totalorder %s212_s26, %s3088_s17  ;;  %p3094_p13 = scmp.lt.s32.totalorder %s3088_s17, %s3088_s17 }
 0x11e   :  { %p3095_p0 = por %p3094_p13, %p3093_p12 }
 0x120   :  { %p3096_p1 = pnand %p3095_p0, %p3089_p11 }
 0x122   :  { %3099 = shalt.err (!%p3096_p1)
}
 0x123   :  { %s3160_s18 = smov 64   ;;  %s3161_s3 = smov 4  }
 0x124   :  { %217 = dma.hbm_to_vmem [thread:$0]  %s3597_s19, 2048, %s212_s26, [#allocation27], %s3160_s18, %s3160_s18, %s3161_s3  }
 0x125   :  { %3122 = dma.done.wait [#allocation3], 128  }
 0x126   :  { %3123 = vsyncadd [#allocation3], 4294967168 }
 0x127   :  { %3124 = dma.done.wait [#allocation6], 8192  }
 0x128   :  { %3125 = vsyncadd [#allocation6], 4294959104 }
 0x129   :  { %3126 = dma.done.wait [#allocation9], 4128  }
 0x12a   :  { %3127 = vsyncadd [#allocation9], 4294963168 }
 0x12b   :  { %3128 = dma.done.wait [#allocation12], 64  }
 0x12c   :  { %3129 = vsyncadd [#allocation12], 4294967232 }
 0x12d   :  { %3130 = dma.done.wait [#allocation15], 4128  }
 0x12e   :  { %3131 = vsyncadd [#allocation15], 4294963168 }
 0x12f   :  { %3132 = dma.done.wait [#allocation18], 4128  }
 0x130   :  { %3133 = vsyncadd [#allocation18], 4294963168 }
 0x131   :  { %3134 = dma.done.wait [#allocation21], 64  }
 0x132   :  { %3135 = vsyncadd [#allocation21], 4294967232 }
 0x133   :  { %3136 = dma.done.wait [#allocation24], 4128  }
 0x134   :  { %3137 = vsyncadd [#allocation24], 4294963168 }
 0x135   :  { %3138 = dma.done.wait [#allocation27], 2048  }
 0x136   :  { %3139 = vsyncadd [#allocation27], 4294965248  ;;  %v3162_v0 = vmov 0   ;;  %s3616_s21 = sld [smem:[#allocation40_spill]]  ;;  %v2440_v7 = vld [vmem:[#allocation5 + $0x4] ss:$8 sps:$4 sm:$0xff]  }
 0x137   :  { %367 = vmatprep.mubr.bf16.mxu0 %v3162_v0  ;;  %v2442_v8 = vld [vmem:[#allocation5] ss:$8 sps:$4 sm:$0xff]   ;;  %v2443_v9 = vld [vmem:[#allocation5 + $0x14] ss:$8 sps:$4 sm:$0xff]   ;;  %584 = vmatprep.subr.bf16.mxu1 %v2440_v7  ;;  %v2445_v11 = vld [vmem:[#allocation5 + $0x10] ss:$8 sps:$4 sm:$0xff]   ;;  %v281_v7 = vlaneseq }
 0x138   :  { %585 = vmatpush1.bf16.msra.mxu1 %v2442_v8  ;;  %v2446_v13 = vld [vmem:[#allocation5 + $0x24] ss:$8 sps:$4 sm:$0xff]   ;;  %v269_v14 = vld [vmem:[#allocation2] sm:$0xff]  ;;  %v2448_v15 = vld [vmem:[#allocation5 + $0x20] ss:$8 sps:$4 sm:$0xff]   ;;  %vm331_vm0 = vcmask 523264  }
 0x139   :  { %586 = vmatprep.subr.bf16.mxu1 %v2443_v9  ;;  %v270_v16 = vpack.c.bf16 %v269_v14, %v269_v14  ;;  %v2449_v17 = vld [vmem:[#allocation5 + $0x34] ss:$8 sps:$4 sm:$0xff]   ;;  %v2451_v18 = vld [vmem:[#allocation5 + $0x30] ss:$8 sps:$4 sm:$0xff]   ;;  %v2452_v19 = vld [vmem:[#allocation5 + $0x44] ss:$8 sps:$4 sm:$0xff]  }
 0x13a   :  { %v2454_v20 = vld [vmem:[#allocation5 + $0x40] ss:$8 sps:$4 sm:$0xff]   ;;  %v2455_v21 = vld [vmem:[#allocation5 + $0x54] ss:$8 sps:$4 sm:$0xff]   ;;  %v2457_v22 = vld [vmem:[#allocation5 + $0x50] ss:$8 sps:$4 sm:$0xff]  }
 0x13b   :  { %v2458_v23 = vld [vmem:[#allocation5 + $0x64] ss:$8 sps:$4 sm:$0xff]   ;;  %v2460_v24 = vld [vmem:[#allocation5 + $0x60] ss:$8 sps:$4 sm:$0xff]   ;;  %v2461_v25 = vld [vmem:[#allocation5 + $0x74] ss:$8 sps:$4 sm:$0xff]  }
 0x13c   :  { %v2428_v1 = vld [vmem:[%s3616_s21 + $0x4] ss:$8 sps:$4 sm:$0xff]   ;;  %v2430_v2 = vld [vmem:[%s3616_s21] ss:$8 sps:$4 sm:$0xff]   ;;  %v2431_v3 = vld [vmem:[%s3616_s21 + $0x14] ss:$8 sps:$4 sm:$0xff]   ;;  %587 = vmatpush1.bf16.msra.mxu1 %v2445_v11 }
 0x13d   :  { %335 = vmatprep.subr.bf16.mxu0 %v2428_v1  ;;  %v2433_v4 = vld [vmem:[%s3616_s21 + $0x10] ss:$8 sps:$4 sm:$0xff]   ;;  %v2434_v5 = vld [vmem:[%s3616_s21 + $0x24] ss:$8 sps:$4 sm:$0xff]   ;;  %v2436_v6 = vld [vmem:[%s3616_s21 + $0x20] ss:$8 sps:$4 sm:$0xff]   ;;  %588 = vmatprep.subr.bf16.mxu1 %v2446_v13 }
 0x13e   :  { %336 = vmatpush1.bf16.msra.mxu0 %v2430_v2  ;;  %v2437_v10 = vld [vmem:[%s3616_s21 + $0x34] ss:$8 sps:$4 sm:$0xff]   ;;  %v2439_v12 = vld [vmem:[%s3616_s21 + $0x30] ss:$8 sps:$4 sm:$0xff]   ;;  %v282_v8 = vshrl.u32 %v281_v7, 7  ;;  %s3617_s0 = sld [smem:[#allocation41_spill]] }
 0x13f   :  { %337 = vmatprep.subr.bf16.mxu0 %v2431_v3  ;;  %v2463_v26 = vld [vmem:[#allocation5 + $0x70] ss:$8 sps:$4 sm:$0xff]   ;;  %v2464_v27 = vld [vmem:[#allocation5 + $0x84] ss:$8 sps:$4 sm:$0xff]   ;;  %v2466_v28 = vld [vmem:[#allocation5 + $0x80] ss:$8 sps:$4 sm:$0xff]  }
 0x140   :  { %589 = vmatpush1.bf16.msra.mxu1 %v2448_v15  ;;  %v2467_v29 = vld [vmem:[#allocation5 + $0x94] ss:$8 sps:$4 sm:$0xff]   ;;  %v2469_v30 = vld [vmem:[#allocation5 + $0x90] ss:$8 sps:$4 sm:$0xff]   ;;  %v2470_v31 = vld [vmem:[#allocation5 + $0xa4] ss:$8 sps:$4 sm:$0xff]  }
 0x141   :  { %590 = vmatprep.subr.bf16.mxu1 %v2449_v17  ;;  %v2472_v32 = vld [vmem:[#allocation5 + $0xa0] ss:$8 sps:$4 sm:$0xff]   ;;  %v2473_v33 = vld [vmem:[#allocation5 + $0xb4] ss:$8 sps:$4 sm:$0xff]   ;;  %v2475_v34 = vld [vmem:[#allocation5 + $0xb0] ss:$8 sps:$4 sm:$0xff]  }
 0x142   :  { %338 = vmatpush1.bf16.msra.mxu0 %v2433_v4  ;;  %v2476_v35 = vld [vmem:[#allocation5 + $0xc4] ss:$8 sps:$4 sm:$0xff]   ;;  %v2478_v36 = vld [vmem:[#allocation5 + $0xc0] ss:$8 sps:$4 sm:$0xff]   ;;  %v2479_v37 = vld [vmem:[#allocation5 + $0xd4] ss:$8 sps:$4 sm:$0xff]  }
 0x143   :  { %339 = vmatprep.subr.bf16.mxu0 %v2434_v5  ;;  %v2481_v38 = vld [vmem:[#allocation5 + $0xd0] ss:$8 sps:$4 sm:$0xff]   ;;  %v2482_v39 = vld [vmem:[#allocation5 + $0xe4] ss:$8 sps:$4 sm:$0xff]   ;;  %v2484_v40 = vld [vmem:[#allocation5 + $0xe0] ss:$8 sps:$4 sm:$0xff]  }
 0x144   :  { %591 = vmatpush1.bf16.msra.mxu1 %v2451_v18  ;;  %v2485_v41 = vld [vmem:[#allocation5 + $0xf4] ss:$8 sps:$4 sm:$0xff]   ;;  %v2487_v42 = vld [vmem:[#allocation5 + $0xf0] ss:$8 sps:$4 sm:$0xff]   ;;  %v2488_v43 = vld [vmem:[#allocation7] ss:$8 sps:$4 sm:$0xff]  }
 0x145   :  { %592 = vmatprep.subr.bf16.mxu1 %v2452_v19  ;;  %v2490_v44 = vld [vmem:[#allocation7 + $0x4] ss:$8 sps:$4 sm:$0xff]   ;;  %v2493_v45 = vld [vmem:[#allocation7 + $0x14] ss:$8 sps:$4 sm:$0xff]   ;;  %v2491_v46 = vld [vmem:[#allocation7 + $0x10] ss:$8 sps:$4 sm:$0xff]  }
 0x146   :  { %340 = vmatpush1.bf16.msra.mxu0 %v2436_v6  ;;  %v2496_v47 = vld [vmem:[#allocation7 + $0x24] ss:$8 sps:$4 sm:$0xff]   ;;  %v2494_v48 = vld [vmem:[#allocation7 + $0x20] ss:$8 sps:$4 sm:$0xff]   ;;  %v2499_v49 = vld [vmem:[#allocation7 + $0x34] ss:$8 sps:$4 sm:$0xff]  }
 0x147   :  { %341 = vmatprep.subr.bf16.mxu0 %v2437_v10  ;;  %v2497_v50 = vld [vmem:[#allocation7 + $0x30] ss:$8 sps:$4 sm:$0xff]   ;;  %v2502_v51 = vld [vmem:[#allocation7 + $0x44] ss:$8 sps:$4 sm:$0xff]   ;;  %v2500_v52 = vld [vmem:[#allocation7 + $0x40] ss:$8 sps:$4 sm:$0xff]  }
 0x148   :  { %593 = vmatpush1.bf16.msra.mxu1 %v2454_v20  ;;  %v2505_v53 = vld [vmem:[#allocation7 + $0x54] ss:$8 sps:$4 sm:$0xff]   ;;  %v2503_v54 = vld [vmem:[#allocation7 + $0x50] ss:$8 sps:$4 sm:$0xff]   ;;  %v2508_v55 = vld [vmem:[#allocation7 + $0x64] ss:$8 sps:$4 sm:$0xff]  }
 0x149   :  { %594 = vmatprep.subr.bf16.mxu1 %v2455_v21  ;;  %v2506_v56 = vld [vmem:[#allocation7 + $0x60] ss:$8 sps:$4 sm:$0xff]   ;;  %v2511_v57 = vld [vmem:[#allocation7 + $0x74] ss:$8 sps:$4 sm:$0xff]   ;;  %v2509_v58 = vld [vmem:[#allocation7 + $0x70] ss:$8 sps:$4 sm:$0xff]  }
 0x14a   :  { %342 = vmatpush1.bf16.msra.mxu0 %v2439_v12  ;;  %v2514_v59 = vld [vmem:[#allocation7 + $0x84] ss:$8 sps:$4 sm:$0xff]   ;;  %v2512_v60 = vld [vmem:[#allocation7 + $0x80] ss:$8 sps:$4 sm:$0xff]   ;;  %v2517_v61 = vld [vmem:[#allocation7 + $0x94] ss:$8 sps:$4 sm:$0xff]  }
 0x14b   :  { %833 = vmatprep.subr.bf16.mxu0 %v2490_v44  ;;  %v2515_v62 = vld [vmem:[#allocation7 + $0x90] ss:$8 sps:$4 sm:$0xff]   ;;  %v2520_v63 = vld [vmem:[#allocation7 + $0xa4] ss:$8 sps:$4 sm:$0xff]   ;;  %v2518_v0 = vld [vmem:[#allocation7 + $0xa0] ss:$8 sps:$4 sm:$0xff]  }
 0x14c   :  { %595 = vmatpush1.bf16.msra.mxu1 %v2457_v22  ;;  %v2523_v1 = vld [vmem:[#allocation7 + $0xb4] ss:$8 sps:$4 sm:$0xff]   ;;  %v2521_v2 = vld [vmem:[#allocation7 + $0xb0] ss:$8 sps:$4 sm:$0xff]   ;;  %v2526_v3 = vld [vmem:[#allocation7 + $0xc4] ss:$8 sps:$4 sm:$0xff]  }
 0x14d   :  { %2174 = vmatmul.mubr.msk.bf16.vlgmr.msra.gmra.mrb[0].mxu0 %vm331_vm0, %v270_v16  ;;  %596 = vmatprep.subr.bf16.mxu1 %v2458_v23  ;;  %v2524_v4 = vld [vmem:[#allocation7 + $0xc0] ss:$8 sps:$4 sm:$0xff]   ;;  %v2529_v5 = vld [vmem:[#allocation7 + $0xd4] ss:$8 sps:$4 sm:$0xff]   ;;  %v2527_v6 = vld [vmem:[#allocation7 + $0xd0] ss:$8 sps:$4 sm:$0xff]  }
 0x14e   :  { %834 = vmatpush1.bf16.msra.mxu0 %v2488_v43  ;;  %v3508_v9 = vsub.s32 0, %v282_v8  ;;  %v279_v10 = vld [vmem:[%s3617_s0] sm:$0x3]  ;;  %v3513_v11 = vsub.s32 1, %v282_v8  ;;  %v2562_v44 = vld [vmem:[#allocation8 + $0x84] ss:$8 sps:$4 sm:$0xff]  }
 0x14f   :  { %835 = vmatprep.subr.bf16.mxu0 %v2493_v45  ;;  %v2557_v43 = vld [vmem:[#allocation8 + $0x70] ss:$8 sps:$4 sm:$0xff]   ;;  %v2560_v45 = vld [vmem:[#allocation8 + $0x80] ss:$8 sps:$4 sm:$0xff]   ;;  %s3618_s13 = sld [smem:[#allocation43_spill]]  ;;  %s3619_s18 = sld [smem:[#allocation45_spill]] }
 0x150   :  { %597 = vmatpush1.bf16.msra.mxu1 %v2460_v24  ;;  %v284_v12 = vrot.slane %v279_v10, %v3508_v9  ;;  %v288_v13 = vrot.slane %v279_v10, %v3513_v11  ;;  %v2532_v24 = vld [vmem:[#allocation7 + $0xe4] ss:$8 sps:$4 sm:$0xff]   ;;  %v2583_v7 = vld [vmem:[#allocation8 + $0xf4] ss:$8 sps:$4 sm:$0xff]   ;;  %v2581_v8 = vld [vmem:[#allocation8 + $0xf0] ss:$8 sps:$4 sm:$0xff]  }
 0x151   :  { %598 = vmatprep.subr.bf16.mxu1 %v2461_v25  ;;  %v2530_v25 = vld [vmem:[#allocation7 + $0xe0] ss:$8 sps:$4 sm:$0xff]   ;;  %v661_v10 = vld [vmem:[%s3584_s6] sm:$0x3]  ;;  %s3163_s3 = smov [#allocation28]  }
 0x152   :  { %836 = vmatpush1.bf16.msra.mxu0 %v2491_v46  ;;  %v2565_v46 = vld [vmem:[#allocation8 + $0x94] ss:$8 sps:$4 sm:$0xff]   ;;  %s2149_s29 = sshll.u32 %s3163_s3, 4  ;;  %s2150_s29 = int_to_ptr.vmem [resolvable:$true] %s2149_s29 }
 0x153   :  { %837 = vmatprep.subr.bf16.mxu0 %v2496_v47  ;;  %v2563_v47 = vld [vmem:[#allocation8 + $0x90] ss:$8 sps:$4 sm:$0xff]   ;;  %s3100_s11 = scalar_lea.vmem %s2150_s29, 128  ;;  %p3105_p3 = scmp.lt.s32.totalorder %s2150_s29, %s2150_s29 }
 0x154   :  { %599 = vmatpush1.bf16.msra.mxu1 %v2463_v26  ;;  %v2535_v26 = vld [vmem:[#allocation7 + $0xf4] ss:$8 sps:$4 sm:$0xff]   ;;  %p3101_p2 = scmp.ne.s32.totalorder %s2150_s29, %s3100_s11  ;;  %p3106_p4 = scmp.lt.s32.totalorder %s3100_s11, %s3100_s11 }
 0x155   :  { %600 = vmatprep.subr.bf16.mxu1 %v2464_v27  ;;  %v2533_v27 = vld [vmem:[#allocation7 + $0xf0] ss:$8 sps:$4 sm:$0xff]  }
 0x156   :  { %838 = vmatpush1.bf16.msra.mxu0 %v2494_v48  ;;  %v2568_v48 = vld [vmem:[#allocation8 + $0xa4] ss:$8 sps:$4 sm:$0xff]   ;;  %p3107_p5 = por %p3106_p4, %p3105_p3 }
 0x157   :  { %839 = vmatprep.subr.bf16.mxu0 %v2499_v49  ;;  %v2566_v49 = vld [vmem:[#allocation8 + $0xa0] ss:$8 sps:$4 sm:$0xff]  }
 0x158   :  { %601 = vmatpush1.bf16.msra.mxu1 %v2466_v28  ;;  %v2536_v28 = vld [vmem:[#allocation8] ss:$8 sps:$4 sm:$0xff]   ;;  %p3108_p6 = pnand %p3107_p5, %p3101_p2 }
 0x159   :  { %602 = vmatprep.subr.bf16.mxu1 %v2467_v29  ;;  %v2538_v29 = vld [vmem:[#allocation8 + $0x4] ss:$8 sps:$4 sm:$0xff]  }
 0x15a   :  { %840 = vmatpush1.bf16.msra.mxu0 %v2497_v50  ;;  %v2571_v50 = vld [vmem:[#allocation8 + $0xb4] ss:$8 sps:$4 sm:$0xff]  }
 0x15b   :  { %841 = vmatprep.subr.bf16.mxu0 %v2502_v51  ;;  %v2569_v51 = vld [vmem:[#allocation8 + $0xb0] ss:$8 sps:$4 sm:$0xff]  }
 0x15c   :  { %603 = vmatpush1.bf16.msra.mxu1 %v2469_v30  ;;  %v2541_v30 = vld [vmem:[#allocation8 + $0x14] ss:$8 sps:$4 sm:$0xff]  }
 0x15d   :  { %604 = vmatprep.subr.bf16.mxu1 %v2470_v31  ;;  %v2539_v31 = vld [vmem:[#allocation8 + $0x10] ss:$8 sps:$4 sm:$0xff]  }
 0x15e   :  { %842 = vmatpush1.bf16.msra.mxu0 %v2500_v52  ;;  %v2574_v52 = vld [vmem:[#allocation8 + $0xc4] ss:$8 sps:$4 sm:$0xff]  }
 0x15f   :  { %843 = vmatprep.subr.bf16.mxu0 %v2505_v53  ;;  %v2572_v53 = vld [vmem:[#allocation8 + $0xc0] ss:$8 sps:$4 sm:$0xff]  }
 0x160   :  { %605 = vmatpush1.bf16.msra.mxu1 %v2472_v32  ;;  %v2544_v32 = vld [vmem:[#allocation8 + $0x24] ss:$8 sps:$4 sm:$0xff]  }
 0x161   :  { %606 = vmatprep.subr.bf16.mxu1 %v2473_v33  ;;  %v2542_v33 = vld [vmem:[#allocation8 + $0x20] ss:$8 sps:$4 sm:$0xff]  }
 0x162   :  { %844 = vmatpush1.bf16.msra.mxu0 %v2503_v54  ;;  %v2577_v54 = vld [vmem:[#allocation8 + $0xd4] ss:$8 sps:$4 sm:$0xff]  }
 0x163   :  { %845 = vmatprep.subr.bf16.mxu0 %v2508_v55  ;;  %v2575_v55 = vld [vmem:[#allocation8 + $0xd0] ss:$8 sps:$4 sm:$0xff]  }
 0x164   :  { %607 = vmatpush1.bf16.msra.mxu1 %v2475_v34  ;;  %v2547_v34 = vld [vmem:[#allocation8 + $0x34] ss:$8 sps:$4 sm:$0xff]  }
 0x165   :  { %608 = vmatprep.subr.bf16.mxu1 %v2476_v35  ;;  %v2545_v35 = vld [vmem:[#allocation8 + $0x30] ss:$8 sps:$4 sm:$0xff]  }
 0x166   :  { %846 = vmatpush1.bf16.msra.mxu0 %v2506_v56  ;;  %v412_v56 = vld [vmem:[%s3618_s13] sm:$0x3] }
 0x167   :  { %847 = vmatprep.subr.bf16.mxu0 %v2511_v57  ;;  %v417_v57 = vrot.slane %v412_v56, %v3508_v9 }
 0x168   :  { %609 = vmatpush1.bf16.msra.mxu1 %v2478_v36  ;;  %v2550_v36 = vld [vmem:[#allocation8 + $0x44] ss:$8 sps:$4 sm:$0xff]  }
 0x169   :  { %610 = vmatprep.subr.bf16.mxu1 %v2479_v37  ;;  %v2548_v37 = vld [vmem:[#allocation8 + $0x40] ss:$8 sps:$4 sm:$0xff]  }
 0x16a   :  { %848 = vmatpush1.bf16.msra.mxu0 %v2509_v58  ;;  %v421_v58 = vrot.slane %v412_v56, %v3513_v11 }
 0x16b   :  { %849 = vmatprep.subr.bf16.mxu0 %v2514_v59 }
 0x16c   :  { %611 = vmatpush1.bf16.msra.mxu1 %v2481_v38  ;;  %v2553_v38 = vld [vmem:[#allocation8 + $0x54] ss:$8 sps:$4 sm:$0xff]  }
 0x16d   :  { %612 = vmatprep.subr.bf16.mxu1 %v2482_v39  ;;  %v2551_v39 = vld [vmem:[#allocation8 + $0x50] ss:$8 sps:$4 sm:$0xff]  }
 0x16e   :  { %850 = vmatpush1.bf16.msra.mxu0 %v2512_v60 }
 0x16f   :  { %851 = vmatprep.subr.bf16.mxu0 %v2517_v61 }
 0x170   :  { %613 = vmatpush1.bf16.msra.mxu1 %v2484_v40  ;;  %v2556_v40 = vld [vmem:[#allocation8 + $0x64] ss:$8 sps:$4 sm:$0xff]  }
 0x171   :  { %614 = vmatprep.subr.bf16.mxu1 %v2485_v41  ;;  %v2554_v41 = vld [vmem:[#allocation8 + $0x60] ss:$8 sps:$4 sm:$0xff]  }
 0x172   :  { %852 = vmatpush1.bf16.msra.mxu0 %v2515_v62 }
 0x173   :  { %853 = vmatprep.subr.bf16.mxu0 %v2520_v63 }
 0x174   :  { %615 = vmatpush1.bf16.msra.mxu1 %v2487_v42  ;;  %v2559_v42 = vld [vmem:[#allocation8 + $0x74] ss:$8 sps:$4 sm:$0xff]  }
 0x175   :  { %1082 = vmatprep.subr.bf16.mxu1 %v2538_v29 }
 0x176   :  { %854 = vmatpush1.bf16.msra.mxu0 %v2518_v0 }
 0x177   :  { %855 = vmatprep.subr.bf16.mxu0 %v2523_v1 }
 0x17a   :  { %856 = vmatpush1.bf16.msra.mxu0 %v2521_v2 }
 0x17b   :  { %857 = vmatprep.subr.bf16.mxu0 %v2526_v3 }
 0x17e   :  { %858 = vmatpush1.bf16.msra.mxu0 %v2524_v4 }
 0x17f   :  { %859 = vmatprep.subr.bf16.mxu0 %v2529_v5  ;;  %v2580_v5 = vld [vmem:[#allocation8 + $0xe4] ss:$8 sps:$4 sm:$0xff]  }
 0x182   :  { %860 = vmatpush1.bf16.msra.mxu0 %v2527_v6  ;;  %v2578_v6 = vld [vmem:[#allocation8 + $0xe0] ss:$8 sps:$4 sm:$0xff]  }
 0x183   :  { %861 = vmatprep.subr.bf16.mxu0 %v2532_v24  ;;  %v910_v24 = vld [vmem:[#allocation10] sm:$0x3] }
 0x186   :  { %862 = vmatpush1.bf16.msra.mxu0 %v2530_v25  ;;  %v915_v25 = vrot.slane %v910_v24, %v3508_v9 }
 0x187   :  { %863 = vmatprep.subr.bf16.mxu0 %v2535_v26  ;;  %v919_v26 = vrot.slane %v910_v24, %v3513_v11  ;;  %v2647_v24 = vld [vmem:[#allocation17 + $0x50] ss:$8 sps:$4 sm:$0xff]  }
 0x18a   :  { %864 = vmatpush1.bf16.msra.mxu0 %v2533_v27 }
 0x220   :  { %v369_v14 = vpop.f32.mrb[0].mxu0 }
 0x221   :  { %v370_v15 = vadd.f32 %v369_v14, %v284_v12  ;;  %v371_v16 = vpop.f32.mrb[1].mxu0  ;;  %v666_v12 = vrot.slane %v661_v10, %v3508_v9 }
 0x222   :  { %v372_v17 = vadd.f32 %v371_v16, %v288_v13  ;;  %v373_v18 = vpop.f32.mrb[2].mxu0  ;;  %v670_v13 = vrot.slane %v661_v10, %v3513_v11  ;;  %v2631_v10 = vld [vmem:[#allocation14 + $0xf4] ss:$8 sps:$4 sm:$0xff]  }
 0x223   :  { %v376_v19 = vmax.f32 %v370_v15, 0.0  ;;  %v374_v20 = vpop.f32.mrb[3].mxu0 }
 0x224   :  { %v377_v21 = vmax.f32 %v372_v17, 0.0 }
 0x225   :  { %v378_v23 = vpack.c.bf16 %v376_v19, %v376_v19 }
 0x226   :  { %v379_v22 = vpack.c.bf16 %v377_v21, %v377_v21 }
 0x228   :  { %616 = vmatprep.mubr.bf16.mxu1 %v379_v22 }
 0x229   :  { %617 = vmatmul.mubr.bf16.vlgmr.msra.gmra.mrb[0].mxu1 %v378_v23 }
 0x22a   :  { %1083 = vmatpush1.bf16.msra.mxu1 %v2536_v28 }
 0x22b   :  { %1084 = vmatprep.subr.bf16.mxu1 %v2541_v30 }
 0x22e   :  { %1085 = vmatpush1.bf16.msra.mxu1 %v2539_v31 }
 0x22f   :  { %1086 = vmatprep.subr.bf16.mxu1 %v2544_v32 }
 0x232   :  { %1087 = vmatpush1.bf16.msra.mxu1 %v2542_v33 }
 0x233   :  { %1088 = vmatprep.subr.bf16.mxu1 %v2547_v34 }
 0x236   :  { %1089 = vmatpush1.bf16.msra.mxu1 %v2545_v35 }
 0x237   :  { %1090 = vmatprep.subr.bf16.mxu1 %v2550_v36  ;;  %v2584_v36 = vld [vmem:[#allocation14] ss:$8 sps:$4 sm:$0xff]  }
 0x23a   :  { %1091 = vmatpush1.bf16.msra.mxu1 %v2548_v37  ;;  %v2586_v37 = vld [vmem:[#allocation14 + $0x4] ss:$8 sps:$4 sm:$0xff]  }
 0x23b   :  { %1092 = vmatprep.subr.bf16.mxu1 %v2553_v38  ;;  %v2589_v38 = vld [vmem:[#allocation14 + $0x14] ss:$8 sps:$4 sm:$0xff]   ;;  %1378 = vmatprep.subr.bf16.mxu0 %v2586_v37  ;;  %v2670_v37 = vld [vmem:[#allocation17 + $0xc4] ss:$8 sps:$4 sm:$0xff]  }
 0x23e   :  { %1093 = vmatpush1.bf16.msra.mxu1 %v2551_v39  ;;  %v2587_v39 = vld [vmem:[#allocation14 + $0x10] ss:$8 sps:$4 sm:$0xff]  }
 0x23f   :  { %1094 = vmatprep.subr.bf16.mxu1 %v2556_v40  ;;  %v2592_v40 = vld [vmem:[#allocation14 + $0x24] ss:$8 sps:$4 sm:$0xff]  }
 0x242   :  { %1095 = vmatpush1.bf16.msra.mxu1 %v2554_v41  ;;  %v2590_v41 = vld [vmem:[#allocation14 + $0x20] ss:$8 sps:$4 sm:$0xff]  }
 0x243   :  { %1096 = vmatprep.subr.bf16.mxu1 %v2559_v42  ;;  %v2595_v42 = vld [vmem:[#allocation14 + $0x34] ss:$8 sps:$4 sm:$0xff]  }
 0x246   :  { %1097 = vmatpush1.bf16.msra.mxu1 %v2557_v43  ;;  %v2593_v43 = vld [vmem:[#allocation14 + $0x30] ss:$8 sps:$4 sm:$0xff]  }
 0x247   :  { %1098 = vmatprep.subr.bf16.mxu1 %v2562_v44  ;;  %v2598_v44 = vld [vmem:[#allocation14 + $0x44] ss:$8 sps:$4 sm:$0xff]  }
 0x24a   :  { %1099 = vmatpush1.bf16.msra.mxu1 %v2560_v45  ;;  %v2596_v45 = vld [vmem:[#allocation14 + $0x40] ss:$8 sps:$4 sm:$0xff]  }
 0x24b   :  { %1100 = vmatprep.subr.bf16.mxu1 %v2565_v46  ;;  %v2601_v46 = vld [vmem:[#allocation14 + $0x54] ss:$8 sps:$4 sm:$0xff]  }
 0x24e   :  { %1101 = vmatpush1.bf16.msra.mxu1 %v2563_v47  ;;  %v2599_v47 = vld [vmem:[#allocation14 + $0x50] ss:$8 sps:$4 sm:$0xff]  }
 0x24f   :  { %1102 = vmatprep.subr.bf16.mxu1 %v2568_v48  ;;  %v2604_v48 = vld [vmem:[#allocation14 + $0x64] ss:$8 sps:$4 sm:$0xff]  }
 0x252   :  { %1103 = vmatpush1.bf16.msra.mxu1 %v2566_v49  ;;  %v2602_v49 = vld [vmem:[#allocation14 + $0x60] ss:$8 sps:$4 sm:$0xff]  }
 0x253   :  { %1104 = vmatprep.subr.bf16.mxu1 %v2571_v50  ;;  %v2607_v50 = vld [vmem:[#allocation14 + $0x74] ss:$8 sps:$4 sm:$0xff]  }
 0x256   :  { %1105 = vmatpush1.bf16.msra.mxu1 %v2569_v51  ;;  %v2605_v51 = vld [vmem:[#allocation14 + $0x70] ss:$8 sps:$4 sm:$0xff]  }
 0x257   :  { %1106 = vmatprep.subr.bf16.mxu1 %v2574_v52  ;;  %v2610_v52 = vld [vmem:[#allocation14 + $0x84] ss:$8 sps:$4 sm:$0xff]  }
 0x25a   :  { %1107 = vmatpush1.bf16.msra.mxu1 %v2572_v53  ;;  %v2608_v53 = vld [vmem:[#allocation14 + $0x80] ss:$8 sps:$4 sm:$0xff]  }
 0x25b   :  { %1108 = vmatprep.subr.bf16.mxu1 %v2577_v54  ;;  %v2613_v54 = vld [vmem:[#allocation14 + $0x94] ss:$8 sps:$4 sm:$0xff]  }
 0x25e   :  { %1109 = vmatpush1.bf16.msra.mxu1 %v2575_v55  ;;  %v2611_v55 = vld [vmem:[#allocation14 + $0x90] ss:$8 sps:$4 sm:$0xff]  }
 0x25f   :  { %1110 = vmatprep.subr.bf16.mxu1 %v2580_v5  ;;  %v2625_v5 = vld [vmem:[#allocation14 + $0xd4] ss:$8 sps:$4 sm:$0xff]  }
 0x262   :  { %1111 = vmatpush1.bf16.msra.mxu1 %v2578_v6  ;;  %v2623_v6 = vld [vmem:[#allocation14 + $0xd0] ss:$8 sps:$4 sm:$0xff]  }
 0x263   :  { %1112 = vmatprep.subr.bf16.mxu1 %v2583_v7  ;;  %v2626_v7 = vld [vmem:[#allocation14 + $0xe0] ss:$8 sps:$4 sm:$0xff]  }
 0x266   :  { %1113 = vmatpush1.bf16.msra.mxu1 %v2581_v8  ;;  %v2628_v8 = vld [vmem:[#allocation14 + $0xe4] ss:$8 sps:$4 sm:$0xff]  }
 0x2fc   :  { %v618_v59 = vpop.f32.mrb[0].mxu1 }
 0x2fd   :  { %v619_v60 = vadd.f32 %v618_v59, %v417_v57  ;;  %v620_v61 = vpop.f32.mrb[1].mxu1 }
 0x2fe   :  { %v621_v62 = vadd.f32 %v620_v61, %v421_v58  ;;  %v622_v63 = vpop.f32.mrb[2].mxu1 }
 0x2ff   :  { %v625_v0 = vmax.f32 %v619_v60, 0.0  ;;  %v623_v1 = vpop.f32.mrb[3].mxu1  ;;  %v2616_v63 = vld [vmem:[#allocation14 + $0xa4] ss:$8 sps:$4 sm:$0xff]  }
 0x300   :  { %v626_v2 = vmax.f32 %v621_v62, 0.0  ;;  %v2619_v1 = vld [vmem:[#allocation14 + $0xb4] ss:$8 sps:$4 sm:$0xff]  }
 0x301   :  { %v627_v4 = vpack.c.bf16 %v625_v0, %v625_v0 }
 0x302   :  { %v628_v3 = vpack.c.bf16 %v626_v2, %v626_v2 }
 0x304   :  { %865 = vmatprep.mubr.bf16.mxu0 %v628_v3  ;;  %v2622_v3 = vld [vmem:[#allocation14 + $0xc4] ss:$8 sps:$4 sm:$0xff]  }
 0x305   :  { %866 = vmatmul.mubr.bf16.vlgmr.msra.gmra.mrb[4].mxu0 %v627_v4  ;;  %v2620_v4 = vld [vmem:[#allocation14 + $0xc0] ss:$8 sps:$4 sm:$0xff]  }
 0x306   :  { %1379 = vmatpush1.bf16.msra.mxu0 %v2584_v36  ;;  %v2665_v36 = vld [vmem:[#allocation17 + $0xb0] ss:$8 sps:$4 sm:$0xff]  }
 0x307   :  { %1380 = vmatprep.subr.bf16.mxu0 %v2589_v38  ;;  %v2668_v38 = vld [vmem:[#allocation17 + $0xc0] ss:$8 sps:$4 sm:$0xff]  }
 0x30a   :  { %1381 = vmatpush1.bf16.msra.mxu0 %v2587_v39  ;;  %v2673_v39 = vld [vmem:[#allocation17 + $0xd4] ss:$8 sps:$4 sm:$0xff]  }
 0x30b   :  { %1382 = vmatprep.subr.bf16.mxu0 %v2592_v40  ;;  %v2671_v40 = vld [vmem:[#allocation17 + $0xd0] ss:$8 sps:$4 sm:$0xff]  }
 0x30e   :  { %1383 = vmatpush1.bf16.msra.mxu0 %v2590_v41 }
 0x30f   :  { %1384 = vmatprep.subr.bf16.mxu0 %v2595_v42 }
 0x312   :  { %1385 = vmatpush1.bf16.msra.mxu0 %v2593_v43 }
 0x313   :  { %1386 = vmatprep.subr.bf16.mxu0 %v2598_v44  ;;  %v1142_v44 = vld [vmem:[#allocation11] sm:$0x3] }
 0x316   :  { %1387 = vmatpush1.bf16.msra.mxu0 %v2596_v45  ;;  %v1156_v45 = vld [vmem:[#allocation13] sm:$0x3] }
 0x317   :  { %1388 = vmatprep.subr.bf16.mxu0 %v2601_v46  ;;  %v1147_v46 = vrot.slane %v1142_v44, %v3508_v9 }
 0x31a   :  { %1389 = vmatpush1.bf16.msra.mxu0 %v2599_v47  ;;  %v1151_v47 = vrot.slane %v1142_v44, %v3513_v11  ;;  %v2706_v44 = vld [vmem:[#allocation23 + $0x84] ss:$8 sps:$4 sm:$0xff]  }
 0x31b   :  { %1390 = vmatprep.subr.bf16.mxu0 %v2604_v48 }
 0x31e   :  { %1391 = vmatpush1.bf16.msra.mxu0 %v2602_v49 }
 0x31f   :  { %1392 = vmatprep.subr.bf16.mxu0 %v2607_v50 }
 0x322   :  { %1393 = vmatpush1.bf16.msra.mxu0 %v2605_v51  ;;  %v1161_v51 = vrot.slane %v1156_v45, %v3508_v9 }
 0x323   :  { %1394 = vmatprep.subr.bf16.mxu0 %v2610_v52  ;;  %v1165_v52 = vrot.slane %v1156_v45, %v3513_v11  ;;  %v2704_v45 = vld [vmem:[#allocation23 + $0x80] ss:$8 sps:$4 sm:$0xff]  }
 0x326   :  { %1395 = vmatpush1.bf16.msra.mxu0 %v2608_v53 }
 0x327   :  { %1396 = vmatprep.subr.bf16.mxu0 %v2613_v54 }
 0x32a   :  { %1397 = vmatpush1.bf16.msra.mxu0 %v2611_v55 }
 0x32b   :  { %1398 = vmatprep.subr.bf16.mxu0 %v2616_v63  ;;  %v2676_v63 = vld [vmem:[#allocation17 + $0xe4] ss:$8 sps:$4 sm:$0xff]  }
 0x3d8   :  { %v867_v14 = vpop.f32.mrb[4].mxu0 }
 0x3d9   :  { %v868_v15 = vadd.f32 %v867_v14, %v666_v12  ;;  %v869_v16 = vpop.f32.mrb[5].mxu0  ;;  %v2629_v12 = vld [vmem:[#allocation14 + $0xf0] ss:$8 sps:$4 sm:$0xff]  }
 0x3da   :  { %v870_v17 = vadd.f32 %v869_v16, %v670_v13  ;;  %v871_v18 = vpop.f32.mrb[6].mxu0  ;;  %v2632_v13 = vld [vmem:[#allocation17] ss:$8 sps:$4 sm:$0xff]   ;;  %v2634_v14 = vld [vmem:[#allocation17 + $0x4] ss:$8 sps:$4 sm:$0xff]  }
 0x3db   :  { %v874_v19 = vmax.f32 %v868_v15, 0.0  ;;  %v872_v20 = vpop.f32.mrb[7].mxu0  ;;  %v2637_v15 = vld [vmem:[#allocation17 + $0x14] ss:$8 sps:$4 sm:$0xff]   ;;  %1627 = vmatprep.subr.bf16.mxu1 %v2634_v14  ;;  %v2635_v16 = vld [vmem:[#allocation17 + $0x10] ss:$8 sps:$4 sm:$0xff]  }
 0x3dc   :  { %v875_v21 = vmax.f32 %v870_v17, 0.0  ;;  %v2640_v17 = vld [vmem:[#allocation17 + $0x24] ss:$8 sps:$4 sm:$0xff]   ;;  %v2638_v18 = vld [vmem:[#allocation17 + $0x20] ss:$8 sps:$4 sm:$0xff]  }
 0x3dd   :  { %v876_v23 = vpack.c.bf16 %v874_v19, %v874_v19  ;;  %v2643_v19 = vld [vmem:[#allocation17 + $0x34] ss:$8 sps:$4 sm:$0xff]   ;;  %v2641_v20 = vld [vmem:[#allocation17 + $0x30] ss:$8 sps:$4 sm:$0xff]  }
 0x3de   :  { %v877_v22 = vpack.c.bf16 %v875_v21, %v875_v21  ;;  %v2646_v21 = vld [vmem:[#allocation17 + $0x44] ss:$8 sps:$4 sm:$0xff]  }
 0x3e0   :  { %1114 = vmatprep.mubr.bf16.mxu1 %v877_v22  ;;  %v2644_v22 = vld [vmem:[#allocation17 + $0x40] ss:$8 sps:$4 sm:$0xff]  }
 0x3e1   :  { %1115 = vmatmul.mubr.bf16.vlgmr.msra.gmra.mrb[4].mxu1 %v876_v23  ;;  %v2649_v23 = vld [vmem:[#allocation17 + $0x54] ss:$8 sps:$4 sm:$0xff]  }
 0x3e2   :  { %1628 = vmatpush1.bf16.msra.mxu1 %v2632_v13 }
 0x3e3   :  { %1629 = vmatprep.subr.bf16.mxu1 %v2637_v15 }
 0x3e6   :  { %1630 = vmatpush1.bf16.msra.mxu1 %v2635_v16  ;;  %v1455_v16 = vld [vmem:[#allocation19] sm:$0x3] }
 0x3e7   :  { %1631 = vmatprep.subr.bf16.mxu1 %v2640_v17  ;;  %v1460_v17 = vrot.slane %v1455_v16, %v3508_v9 }
 0x3ea   :  { %1632 = vmatpush1.bf16.msra.mxu1 %v2638_v18  ;;  %v1464_v18 = vrot.slane %v1455_v16, %v3513_v11  ;;  %v2739_v16 = vld [vmem:[#allocation26 + $0x28] sm:$0xff]  }
 0x3eb   :  { %1633 = vmatprep.subr.bf16.mxu1 %v2643_v19 }
 0x3ee   :  { %1634 = vmatpush1.bf16.msra.mxu1 %v2641_v20 }
 0x3ef   :  { %1635 = vmatprep.subr.bf16.mxu1 %v2646_v21 }
 0x3f2   :  { %1636 = vmatpush1.bf16.msra.mxu1 %v2644_v22 }
 0x3f3   :  { %1637 = vmatprep.subr.bf16.mxu1 %v2649_v23 }
 0x3f6   :  { %1638 = vmatpush1.bf16.msra.mxu1 %v2647_v24 }
 0x4b4   :  { %v1116_v27 = vpop.f32.mrb[4].mxu1 }
 0x4b5   :  { %v1117_v28 = vadd.f32 %v1116_v27, %v915_v25  ;;  %v1118_v29 = vpop.f32.mrb[5].mxu1  ;;  %v2652_v25 = vld [vmem:[#allocation17 + $0x64] ss:$8 sps:$4 sm:$0xff]   ;;  %v2655_v27 = vld [vmem:[#allocation17 + $0x74] ss:$8 sps:$4 sm:$0xff]  }
 0x4b6   :  { %v1119_v30 = vadd.f32 %v1118_v29, %v919_v26  ;;  %v1120_v31 = vpop.f32.mrb[6].mxu1  ;;  %v2650_v26 = vld [vmem:[#allocation17 + $0x60] ss:$8 sps:$4 sm:$0xff]   ;;  %1639 = vmatprep.subr.bf16.mxu1 %v2652_v25  ;;  %v2658_v29 = vld [vmem:[#allocation17 + $0x84] ss:$8 sps:$4 sm:$0xff]  }
 0x4b7   :  { %v1121_v32 = vpop.f32.mrb[7].mxu1  ;;  %v1123_v33 = vadd.f32 %v1117_v28, %v625_v0  ;;  %v2614_v0 = vld [vmem:[#allocation14 + $0xa0] ss:$8 sps:$4 sm:$0xff]   ;;  %1640 = vmatpush1.bf16.msra.mxu1 %v2650_v26  ;;  %v2653_v28 = vld [vmem:[#allocation17 + $0x70] ss:$8 sps:$4 sm:$0xff]  }
 0x4b8   :  { %v1124_v34 = vadd.f32 %v1119_v30, %v626_v2  ;;  %1399 = vmatpush1.bf16.msra.mxu0 %v2614_v0  ;;  %v2617_v2 = vld [vmem:[#allocation14 + $0xb0] ss:$8 sps:$4 sm:$0xff]   ;;  %1641 = vmatprep.subr.bf16.mxu1 %v2655_v27  ;;  %v2656_v30 = vld [vmem:[#allocation17 + $0x80] ss:$8 sps:$4 sm:$0xff]  }
 0x4b9   :  { %1400 = vmatprep.subr.bf16.mxu0 %v2619_v1  ;;  %v2661_v31 = vld [vmem:[#allocation17 + $0x94] ss:$8 sps:$4 sm:$0xff]   ;;  %v2659_v32 = vld [vmem:[#allocation17 + $0x90] ss:$8 sps:$4 sm:$0xff]   ;;  %v2674_v0 = vld [vmem:[#allocation17 + $0xe0] ss:$8 sps:$4 sm:$0xff]  }
 0x4ba   :  { %v1125_v35 = vadd.f32 %v1124_v34, %v1123_v33  ;;  %v1206_v1 = vld [vmem:[#allocation16] sm:$0x3] }
 0x4bb   :  { %1642 = vmatpush1.bf16.msra.mxu1 %v2653_v28  ;;  %v2680_v28 = vld [vmem:[#allocation23] ss:$8 sps:$4 sm:$0xff]  }
 0x4bc   :  { %1126 = vadd.xlane.f32.xlu0 %v1125_v35  ;;  %1401 = vmatpush1.bf16.msra.mxu0 %v2617_v2  ;;  %v2667_v35 = vld [vmem:[#allocation17 + $0xb4] ss:$8 sps:$4 sm:$0xff]   ;;  %v1211_v2 = vrot.slane %v1206_v1, %v3508_v9 }
 0x4bd   :  { %1402 = vmatprep.subr.bf16.mxu0 %v2622_v3  ;;  %1643 = vmatprep.subr.bf16.mxu1 %v2658_v29  ;;  %v1215_v3 = vrot.slane %v1206_v1, %v3513_v11  ;;  %v2682_v29 = vld [vmem:[#allocation23 + $0x4] ss:$8 sps:$4 sm:$0xff]   ;;  %v2727_v1 = vld [vmem:[#allocation23 + $0xf4] ss:$8 sps:$4 sm:$0xff]  }
 0x4bf   :  { %1644 = vmatpush1.bf16.msra.mxu1 %v2656_v30  ;;  %v2685_v30 = vld [vmem:[#allocation23 + $0x14] ss:$8 sps:$4 sm:$0xff]  }
 0x4c0   :  { %1403 = vmatpush1.bf16.msra.mxu0 %v2620_v4  ;;  %1645 = vmatprep.subr.bf16.mxu1 %v2661_v31  ;;  %v2683_v31 = vld [vmem:[#allocation23 + $0x10] ss:$8 sps:$4 sm:$0xff]  }
 0x4c1   :  { %1404 = vmatprep.subr.bf16.mxu0 %v2625_v5 }
 0x4c3   :  { %1646 = vmatpush1.bf16.msra.mxu1 %v2659_v32  ;;  %v2688_v32 = vld [vmem:[#allocation23 + $0x24] ss:$8 sps:$4 sm:$0xff]  }
 0x4c4   :  { %1405 = vmatpush1.bf16.msra.mxu0 %v2623_v6 }
 0x4c5   :  { %1406 = vmatprep.subr.bf16.mxu0 %v2628_v8 }
 0x4c8   :  { %1407 = vmatpush1.bf16.msra.mxu0 %v2626_v7 }
 0x4c9   :  { %1408 = vmatprep.subr.bf16.mxu0 %v2631_v10 }
 0x4cc   :  { %1409 = vmatpush1.bf16.msra.mxu0 %v2629_v12 }
 0x4cd   :  { %1922 = vmatprep.subr.bf16.mxu0 %v2682_v29 }
 0x549   :  { %v1127_v56 = vpop.xlane.xlu0 %1126 }
 0x54a   :  { %v1129_v57 = vmul.f32 0.00390625, %v1127_v56 }
 0x54c   :  { %v3529_v58 = vsub.f32 %v1123_v33, %v1129_v57  ;;  %v3531_v59 = vsub.f32 %v1124_v34, %v1129_v57  ;;  %v2664_v33 = vld [vmem:[#allocation17 + $0xa4] ss:$8 sps:$4 sm:$0xff]   ;;  %v2662_v34 = vld [vmem:[#allocation17 + $0xa0] ss:$8 sps:$4 sm:$0xff]  }
 0x54d   :  { %1647 = vmatprep.subr.bf16.mxu1 %v2664_v33  ;;  %v2686_v33 = vld [vmem:[#allocation23 + $0x20] ss:$8 sps:$4 sm:$0xff]  }
 0x54e   :  { %v1132_v60 = vmul.f32 %v3529_v58, %v3529_v58  ;;  %v1133_v61 = vmul.f32 %v3531_v59, %v3531_v59  ;;  %1648 = vmatpush1.bf16.msra.mxu1 %v2662_v34  ;;  %v2691_v34 = vld [vmem:[#allocation23 + $0x34] ss:$8 sps:$4 sm:$0xff]  }
 0x54f   :  { %1649 = vmatprep.subr.bf16.mxu1 %v2667_v35  ;;  %v2689_v35 = vld [vmem:[#allocation23 + $0x30] ss:$8 sps:$4 sm:$0xff]  }
 0x550   :  { %v1134_v62 = vadd.f32 %v1133_v61, %v1132_v60 }
 0x552   :  { %1135 = vadd.xlane.f32.xlu0 %v1134_v62  ;;  %1650 = vmatpush1.bf16.msra.mxu1 %v2665_v36  ;;  %v2694_v36 = vld [vmem:[#allocation23 + $0x44] ss:$8 sps:$4 sm:$0xff]  }
 0x553   :  { %1651 = vmatprep.subr.bf16.mxu1 %v2670_v37  ;;  %v2692_v37 = vld [vmem:[#allocation23 + $0x40] ss:$8 sps:$4 sm:$0xff]  }
 0x556   :  { %1652 = vmatpush1.bf16.msra.mxu1 %v2668_v38  ;;  %v2697_v38 = vld [vmem:[#allocation23 + $0x54] ss:$8 sps:$4 sm:$0xff]  }
 0x557   :  { %1653 = vmatprep.subr.bf16.mxu1 %v2673_v39  ;;  %v2695_v39 = vld [vmem:[#allocation23 + $0x50] ss:$8 sps:$4 sm:$0xff]  }
 0x55a   :  { %1654 = vmatpush1.bf16.msra.mxu1 %v2671_v40  ;;  %v2700_v40 = vld [vmem:[#allocation23 + $0x64] ss:$8 sps:$4 sm:$0xff]  }
 0x55b   :  { %1655 = vmatprep.subr.bf16.mxu1 %v2676_v63  ;;  %v2721_v63 = vld [vmem:[#allocation23 + $0xd4] ss:$8 sps:$4 sm:$0xff]  }
 0x55e   :  { %1656 = vmatpush1.bf16.msra.mxu1 %v2674_v0  ;;  %v2719_v0 = vld [vmem:[#allocation23 + $0xd0] ss:$8 sps:$4 sm:$0xff]  }
 0x5df   :  { %v1136_v41 = vpop.xlane.xlu0 %1135 }
 0x5e0   :  { %v1137_v42 = vmul.f32 0.00390625, %v1136_v41  ;;  %v2698_v41 = vld [vmem:[#allocation23 + $0x60] ss:$8 sps:$4 sm:$0xff]  }
 0x5e2   :  { %v1138_v43 = vadd.f32 1e-05, %v1137_v42  ;;  %v2703_v42 = vld [vmem:[#allocation23 + $0x74] ss:$8 sps:$4 sm:$0xff]  }
 0x5e4   :  { %2744 = vrsqrt.f32 %v1138_v43  ;;  %v2701_v43 = vld [vmem:[#allocation23 + $0x70] ss:$8 sps:$4 sm:$0xff]  }
 0x5ee   :  { %v2745_v48 = vpop.eup %2744 }
 0x5ef   :  { %v1140_v49 = vmul.f32 %v2745_v48, %v3529_v58  ;;  %v1141_v50 = vmul.f32 %v2745_v48, %v3531_v59  ;;  %v2679_v58 = vld [vmem:[#allocation17 + $0xf4] ss:$8 sps:$4 sm:$0xff]   ;;  %v2677_v59 = vld [vmem:[#allocation17 + $0xf0] ss:$8 sps:$4 sm:$0xff]  }
 0x5f0   :  { %1657 = vmatprep.subr.bf16.mxu1 %v2679_v58  ;;  %v2722_v58 = vld [vmem:[#allocation23 + $0xe0] ss:$8 sps:$4 sm:$0xff]  }
 0x5f1   :  { %v1155_v53 = vmul.f32 %v1151_v47, %v1141_v50  ;;  %v1154_v54 = vmul.f32 %v1147_v46, %v1140_v49  ;;  %1658 = vmatpush1.bf16.msra.mxu1 %v2677_v59  ;;  %v2709_v46 = vld [vmem:[#allocation23 + $0x94] ss:$8 sps:$4 sm:$0xff]   ;;  %v2707_v47 = vld [vmem:[#allocation23 + $0x90] ss:$8 sps:$4 sm:$0xff]   ;;  %v2724_v59 = vld [vmem:[#allocation23 + $0xe4] ss:$8 sps:$4 sm:$0xff]  }
 0x5f3   :  { %v1169_v55 = vadd.f32 %v1165_v52, %v1155_v53  ;;  %v1168_v56 = vadd.f32 %v1161_v51, %v1154_v54 }
 0x5f5   :  { %v1171_v57 = vmax.f32 %v1169_v55, 0.0  ;;  %v1170_v60 = vmax.f32 %v1168_v56, 0.0  ;;  %v2712_v55 = vld [vmem:[#allocation23 + $0xa4] ss:$8 sps:$4 sm:$0xff]   ;;  %v2710_v56 = vld [vmem:[#allocation23 + $0xa0] ss:$8 sps:$4 sm:$0xff]  }
 0x5f7   :  { %v1173_v61 = vpack.c.bf16 %v1171_v57, %v1171_v57  ;;  %v1172_v62 = vpack.c.bf16 %v1170_v60, %v1170_v60 }
 0x5f9   :  { %1410 = vmatprep.mubr.bf16.mxu0 %v1173_v61  ;;  %v2718_v61 = vld [vmem:[#allocation23 + $0xc4] ss:$8 sps:$4 sm:$0xff]  }
 0x5fa   :  { %1411 = vmatmul.mubr.bf16.vlgmr.msra.gmra.mrb[8].mxu0 %v1172_v62  ;;  %v2716_v62 = vld [vmem:[#allocation23 + $0xc0] ss:$8 sps:$4 sm:$0xff]  }
 0x5fb   :  { %1923 = vmatpush1.bf16.msra.mxu0 %v2680_v28 }
 0x5fc   :  { %1924 = vmatprep.subr.bf16.mxu0 %v2685_v30 }
 0x5ff   :  { %1925 = vmatpush1.bf16.msra.mxu0 %v2683_v31 }
 0x600   :  { %1926 = vmatprep.subr.bf16.mxu0 %v2688_v32 }
 0x603   :  { %1927 = vmatpush1.bf16.msra.mxu0 %v2686_v33 }
 0x604   :  { %1928 = vmatprep.subr.bf16.mxu0 %v2691_v34 }
 0x607   :  { %1929 = vmatpush1.bf16.msra.mxu0 %v2689_v35 }
 0x608   :  { %1930 = vmatprep.subr.bf16.mxu0 %v2694_v36 }
 0x60b   :  { %1931 = vmatpush1.bf16.msra.mxu0 %v2692_v37  ;;  %v2740_v37 = vld [vmem:[#allocation26 + $0x70] sm:$0xff]  }
 0x60c   :  { %1932 = vmatprep.subr.bf16.mxu0 %v2697_v38  ;;  %v2741_v38 = vld [vmem:[#allocation26 + $0x30] sm:$0xff]  }
 0x60f   :  { %1933 = vmatpush1.bf16.msra.mxu0 %v2695_v39  ;;  %v2742_v39 = vld [vmem:[#allocation26 + $0x78] sm:$0xff]  }
 0x610   :  { %1934 = vmatprep.subr.bf16.mxu0 %v2700_v40  ;;  %v2743_v40 = vld [vmem:[#allocation26 + $0x38] sm:$0xff]  }
 0x613   :  { %1935 = vmatpush1.bf16.msra.mxu0 %v2698_v41  ;;  %v1750_v41 = vld [vmem:[#allocation25] sm:$0x3] }
 0x614   :  { %1936 = vmatprep.subr.bf16.mxu0 %v2703_v42  ;;  %v1755_v42 = vrot.slane %v1750_v41, %v3508_v9 }
 0x617   :  { %1937 = vmatpush1.bf16.msra.mxu0 %v2701_v43  ;;  %v1759_v43 = vrot.slane %v1750_v41, %v3513_v11 }
 0x618   :  { %1938 = vmatprep.subr.bf16.mxu0 %v2706_v44 }
 0x61b   :  { %1939 = vmatpush1.bf16.msra.mxu0 %v2704_v45 }
 0x61c   :  { %1940 = vmatprep.subr.bf16.mxu0 %v2709_v46 }
 0x61f   :  { %1941 = vmatpush1.bf16.msra.mxu0 %v2707_v47 }
 0x620   :  { %1942 = vmatprep.subr.bf16.mxu0 %v2712_v55  ;;  %v2367_v55 = vld [vmem:[%s3619_s18] ss:$0 sm:$0xff] }
 0x623   :  { %1943 = vmatpush1.bf16.msra.mxu0 %v2710_v56 }
 0x6cd   :  { %v1412_v4 = vpop.f32.mrb[8].mxu0 }
 0x6ce   :  { %v1413_v5 = vadd.f32 %v1412_v4, %v1211_v2  ;;  %v1414_v6 = vpop.f32.mrb[9].mxu0  ;;  %v2725_v2 = vld [vmem:[#allocation23 + $0xf0] ss:$8 sps:$4 sm:$0xff]   ;;  %v2729_v4 = vld [vmem:[#allocation26] sm:$0xff]  }
 0x6cf   :  { %v1415_v7 = vadd.f32 %v1414_v6, %v1215_v3  ;;  %v1416_v8 = vpop.f32.mrb[10].mxu0  ;;  %v2728_v3 = vld [vmem:[#allocation26 + $0x40] sm:$0xff]   ;;  %v2731_v6 = vld [vmem:[#allocation26 + $0x8] sm:$0xff]  }
 0x6d0   :  { %v1419_v10 = vmax.f32 %v1413_v5, 0.0  ;;  %v1417_v12 = vpop.f32.mrb[11].mxu0  ;;  %v2730_v5 = vld [vmem:[#allocation26 + $0x48] sm:$0xff]   ;;  %2384 = vmatprep.subr.bf16.mxu1 %v2728_v3  ;;  %v2733_v8 = vld [vmem:[#allocation26 + $0x10] sm:$0xff]  }
 0x6d1   :  { %v1420_v13 = vmax.f32 %v1415_v7, 0.0  ;;  %v2732_v7 = vld [vmem:[#allocation26 + $0x50] sm:$0xff]   ;;  %v2735_v12 = vld [vmem:[#allocation26 + $0x18] sm:$0xff]  }
 0x6d2   :  { %v1421_v15 = vpack.c.bf16 %v1419_v10, %v1419_v10  ;;  %v2734_v10 = vld [vmem:[#allocation26 + $0x58] sm:$0xff]  }
 0x6d3   :  { %v1422_v14 = vpack.c.bf16 %v1420_v13, %v1420_v13  ;;  %v2736_v13 = vld [vmem:[#allocation26 + $0x60] sm:$0xff]  }
 0x6d5   :  { %1659 = vmatprep.mubr.bf16.mxu1 %v1422_v14  ;;  %v2737_v14 = vld [vmem:[#allocation26 + $0x20] sm:$0xff]  }
 0x6d6   :  { %1660 = vmatmul.mubr.bf16.vlgmr.msra.gmra.mrb[8].mxu1 %v1421_v15  ;;  %v2738_v15 = vld [vmem:[#allocation26 + $0x68] sm:$0xff]  }
 0x6d7   :  { %2385 = vmatpush3.bf16.msra.mxu1 %v2729_v4 }
 0x6d8   :  { %2386 = vmatprep.subr.bf16.mxu1 %v2730_v5 }
 0x6db   :  { %2387 = vmatpush3.bf16.msra.mxu1 %v2731_v6 }
 0x6dc   :  { %2388 = vmatprep.subr.bf16.mxu1 %v2732_v7 }
 0x6df   :  { %2389 = vmatpush3.bf16.msra.mxu1 %v2733_v8 }
 0x6e0   :  { %2390 = vmatprep.subr.bf16.mxu1 %v2734_v10 }
 0x6e3   :  { %2391 = vmatpush3.bf16.msra.mxu1 %v2735_v12 }
 0x6e4   :  { %2392 = vmatprep.subr.bf16.mxu1 %v2736_v13 }
 0x6e7   :  { %2393 = vmatpush3.bf16.msra.mxu1 %v2737_v14 }
 0x6e8   :  { %2394 = vmatprep.subr.bf16.mxu1 %v2738_v15 }
 0x6eb   :  { %2395 = vmatpush3.bf16.msra.mxu1 %v2739_v16 }
 0x6ec   :  { %2396 = vmatprep.subr.bf16.mxu1 %v2740_v37 }
 0x6ef   :  { %2397 = vmatpush3.bf16.msra.mxu1 %v2741_v38 }
 0x6f0   :  { %2398 = vmatprep.subr.bf16.mxu1 %v2742_v39 }
 0x6f3   :  { %2399 = vmatpush3.bf16.msra.mxu1 %v2743_v40 }
 0x7a9   :  { %v1661_v19 = vpop.f32.mrb[8].mxu1 }
 0x7aa   :  { %v1662_v20 = vadd.f32 %v1661_v19, %v1460_v17  ;;  %v1663_v21 = vpop.f32.mrb[9].mxu1 }
 0x7ab   :  { %v1664_v22 = vadd.f32 %v1663_v21, %v1464_v18  ;;  %v1665_v23 = vpop.f32.mrb[10].mxu1  ;;  %v1700_v21 = vld [vmem:[#allocation22] sm:$0x3] }
 0x7ac   :  { %v1666_v24 = vpop.f32.mrb[11].mxu1  ;;  %v1668_v25 = vadd.f32 %v1662_v20, %v1170_v60  ;;  %v2713_v60 = vld [vmem:[#allocation23 + $0xb0] ss:$8 sps:$4 sm:$0xff]   ;;  %v1686_v20 = vld [vmem:[#allocation20] sm:$0x3]  ;;  %v1709_v28 = vrot.slane %v1700_v21, %v3513_v11 }
 0x7ad   :  { %v1669_v26 = vadd.f32 %v1664_v22, %v1171_v57  ;;  %v2715_v57 = vld [vmem:[#allocation23 + $0xb4] ss:$8 sps:$4 sm:$0xff]   ;;  %v1691_v22 = vrot.slane %v1686_v20, %v3508_v9  ;;  %v1695_v23 = vrot.slane %v1686_v20, %v3513_v11 }
 0x7ae   :  { %1944 = vmatprep.subr.bf16.mxu0 %v2715_v57 }
 0x7af   :  { %v1670_v27 = vadd.f32 %v1669_v26, %v1668_v25  ;;  %1945 = vmatpush1.bf16.msra.mxu0 %v2713_v60 }
 0x7b0   :  { %1946 = vmatprep.subr.bf16.mxu0 %v2718_v61 }
 0x7b1   :  { %1671 = vadd.xlane.f32.xlu1 %v1670_v27  ;;  %v1705_v27 = vrot.slane %v1700_v21, %v3508_v9 }
 0x7b3   :  { %1947 = vmatpush1.bf16.msra.mxu0 %v2716_v62 }
 0x7b4   :  { %1948 = vmatprep.subr.bf16.mxu0 %v2721_v63 }
 0x7b7   :  { %1949 = vmatpush1.bf16.msra.mxu0 %v2719_v0 }
 0x7b8   :  { %1950 = vmatprep.subr.bf16.mxu0 %v2724_v59 }
 0x7bb   :  { %1951 = vmatpush1.bf16.msra.mxu0 %v2722_v58 }
 0x7bc   :  { %1952 = vmatprep.subr.bf16.mxu0 %v2727_v1 }
 0x7bf   :  { %1953 = vmatpush1.bf16.msra.mxu0 %v2725_v2 }
 0x83e   :  { %v1672_v48 = vpop.xlane.xlu1 %1671 }
 0x83f   :  { %v1673_v49 = vmul.f32 0.00390625, %v1672_v48 }
 0x841   :  { %v3547_v50 = vsub.f32 %v1668_v25, %v1673_v49  ;;  %v3549_v51 = vsub.f32 %v1669_v26, %v1673_v49 }
 0x843   :  { %v1676_v52 = vmul.f32 %v3547_v50, %v3547_v50  ;;  %v1677_v53 = vmul.f32 %v3549_v51, %v3549_v51 }
 0x845   :  { %v1678_v54 = vadd.f32 %v1677_v53, %v1676_v52 }
 0x847   :  { %1679 = vadd.xlane.f32.xlu1 %v1678_v54 }
 0x8d4   :  { %v1680_v17 = vpop.xlane.xlu1 %1679 }
 0x8d5   :  { %v1681_v18 = vmul.f32 0.00390625, %v1680_v17 }
 0x8d7   :  { %v1682_v19 = vadd.f32 1e-05, %v1681_v18 }
 0x8d9   :  { %2746 = vrsqrt.f32 %v1682_v19 }
 0x8e3   :  { %v2747_v24 = vpop.eup %2746 }
 0x8e4   :  { %v1684_v25 = vmul.f32 %v2747_v24, %v3547_v50  ;;  %v1685_v26 = vmul.f32 %v2747_v24, %v3549_v51 }
 0x8e6   :  { %v1699_v29 = vmul.f32 %v1695_v23, %v1685_v26  ;;  %v1698_v30 = vmul.f32 %v1691_v22, %v1684_v25 }
 0x8e8   :  { %v1713_v31 = vadd.f32 %v1709_v28, %v1699_v29  ;;  %v1712_v32 = vadd.f32 %v1705_v27, %v1698_v30 }
 0x8ea   :  { %v1715_v33 = vmax.f32 %v1713_v31, 0.0  ;;  %v1714_v34 = vmax.f32 %v1712_v32, 0.0 }
 0x8ec   :  { %v1717_v35 = vpack.c.bf16 %v1715_v33, %v1715_v33  ;;  %v1716_v36 = vpack.c.bf16 %v1714_v34, %v1714_v34 }
 0x8ee   :  { %1954 = vmatprep.mubr.bf16.mxu0 %v1717_v35 }
 0x8ef   :  { %1955 = vmatmul.mubr.bf16.vlgmr.msra.gmra.mrb[12].mxu0 %v1716_v36 }
 0x9c2   :  { %v1956_v44 = vpop.f32.mrb[12].mxu0 }
 0x9c3   :  { %v1957_v45 = vadd.f32 %v1956_v44, %v1755_v42  ;;  %v1958_v46 = vpop.f32.mrb[13].mxu0 }
 0x9c4   :  { %v1959_v47 = vadd.f32 %v1958_v46, %v1759_v43  ;;  %v1960_v48 = vpop.f32.mrb[14].mxu0 }
 0x9c5   :  { %v1963_v49 = vmax.f32 %v1957_v45, 0.0  ;;  %v1961_v50 = vpop.f32.mrb[15].mxu0 }
 0x9c6   :  { %v1964_v51 = vmax.f32 %v1959_v47, 0.0 }
 0x9c7   :  { %v1965_v53 = vpack.c.bf16 %v1963_v49, %v1963_v49 }
 0x9c8   :  { %v1966_v52 = vpack.c.bf16 %v1964_v51, %v1964_v51 }
 0x9ca   :  { %2134 = vmatprep.mubr.bf16.mxu1 %v1966_v52 }
 0x9cb   :  { %2135 = vmatmul.mubr.bf16.vlgmr.msra.gmra.mrb[12].mxu1 %v1965_v53 }
 0xa9e   :  { %v2400_v54 = vpop.f32.mrb[12].mxu1 }
 0xa9f   :  { %v2401_v9 = vpop.f32.mrb[13].mxu1 }
 0xaa0   :  { %v2402_v11 = vadd.f32 %v2401_v9, %v2400_v54  ;;  %v2403_v56 = vpop.f32.mrb[14].mxu1 }
 0xaa1   :  { %v2404_v57 = vpop.f32.mrb[15].mxu1 }
 0xaa2   :  { %v2137_v60 = vadd.f32 %v2402_v11, %v2367_v55 }
 0xaa4   :  { %2142 = vst [vmem:[#allocation28] sm:$0xff] %v2137_v60 }
 0xaa5   :  { %3111 = shalt.err (!%p3108_p6)
}
 0xaa6   :  { %s3620_s21 = sld [smem:[#allocation46_spill]] }
 0xaac   :  { %s3112_s14 = scalar_lea.hbm %s3620_s21, 128 }
 0xaad   :  { %p3113_p7 = scmp.ne.s32.totalorder %s3620_s21, %s3112_s14  ;;  %p3116_p8 = scmp.lt.u32.totalorder %s3112_s14, %s3620_s21 }
 0xaaf   :  { %p3118_p9 = pnand %p3116_p8, %p3113_p7 }
 0xab1   :  { %3121 = shalt.err (!%p3118_p9)
}
 0xab2   :  { %2152 = dma.vmem_to_hbm [thread:$0]  %s2150_s29, 128, %s3620_s21, [#allocation4]  }
 0xab3   :  { %3140 = dma.done.wait [#allocation4], 128  }
 0xab4   :  { %3141 = vsyncadd [#allocation4], 4294967168 }
 0xab5   :  { %2156 = vsyncpa [#allocation3], 1 }
 0xab6   :  { %2157 = vsyncpa [#allocation6], 1 }
 0xab7   :  { %2158 = vsyncpa [#allocation9], 1 }
 0xab8   :  { %2159 = vsyncpa [#allocation12], 1 }
 0xab9   :  { %2160 = vsyncpa [#allocation15], 1 }
 0xaba   :  { %2161 = vsyncpa [#allocation18], 1 }
 0xabb   :  { %2162 = vsyncpa [#allocation21], 1 }
 0xabc   :  { %2163 = vsyncpa [#allocation24], 1 }
 0xabd   :  { %2164 = vsyncpa [#allocation27], 1 }
 0xabe   :  { %2165 = vsyncpa [#allocation4], 1 }

</bundles_post_ra>
